<compile_context>
chip_gen: v5e
topology: v5e:2x2
jax: 0.10.0
libtpu: 0.0.40
codegen_flags: <defaults>
</compile_context>

<pallas_src>
import functools
import math

import jax
import jax.numpy as jnp
from jax.experimental import pallas as pl
from jax.experimental.pallas import tpu as pltpu


def _round_up(x, m):
    return ((x + m - 1) // m) * m


def _patch_embed_kernel(x_ref, w_ref, b_ref, o_ref):
    # x_ref: (TM, K)  w_ref: (K, N)  b_ref: (1, N) f32  o_ref: (TM, N)
    # Operands stay in their (possibly bf16) native dtype; the MXU accumulates in f32.
    acc = jnp.dot(x_ref[...], w_ref[...], preferred_element_type=jnp.float32)
    o_ref[...] = (acc + b_ref[...]).astype(o_ref.dtype)


@functools.partial(jax.jit, static_argnames=("patch_size", "tile_m", "compute_dtype"))
def patch_embedding(x, w, b, *, patch_size=16, tile_m=1024, compute_dtype=None):
    """x: (B, C, H, W); w: (num_hiddens, C, P, P); b: (num_hiddens,).
    Returns (B, num_patches, num_hiddens), matching conv(X).flatten(2).transpose(1, 2).

    compute_dtype: optional dtype (e.g. jnp.bfloat16) for the MXU operands; accumulation is f32
    and the output keeps x.dtype.
    """
    B, C, H, W = x.shape
    P = patch_size
    nh, nw = H // P, W // P
    # Match PyTorch stride==kernel Conv2d semantics: trailing pixels that don't fill a full
    # patch are dropped (no-op slice when H/W are divisible by P).
    x = x[:, :, : nh * P, : nw * P]
    num_patches = nh * nw
    N = w.shape[0]          # num_hiddens
    K = C * P * P
    M = B * num_patches

    out_dtype = x.dtype
    cdt = jnp.dtype(compute_dtype) if compute_dtype is not None else out_dtype

    # --- patchify / im2col (matches Conv2d's (C, kH, kW) flattening order) ---
    xp = (x.reshape(B, C, nh, P, nw, P)
           .transpose(0, 2, 4, 1, 3, 5)          # (B, nh, nw, C, P, P)
           .reshape(M, K)).astype(cdt)
    w2d = w.reshape(N, K).T.astype(cdt)           # (K, N), same compute dtype as x (no promotion)
    b2d = b.astype(jnp.float32).reshape(1, N)     # f32 once here; no per-step convert in kernel

    # --- row tile: as large as VMEM comfortably allows, but capped at ceil(M/2) (sublane-rounded)
    #     so the parallel row axis always has >= 2 steps and both v7x TensorCores get work. ---
    tile_m = max(8, min(tile_m, _round_up(pl.cdiv(M, 2), 8)))
    grid_m = pl.cdiv(M, tile_m)
    Mp = grid_m * tile_m
    Kp = _round_up(K, 128)
    Np = _round_up(N, 128)
    if (Mp, Kp) != (M, K):
        xp = jnp.pad(xp, ((0, Mp - M), (0, Kp - K)))
    if (Kp, Np) != (K, N):
        w2d = jnp.pad(w2d, ((0, Kp - K), (0, Np - N)))
    if Np != N:
        b2d = jnp.pad(b2d, ((0, 0), (0, Np - N)))

    out = pl.pallas_call(
        _patch_embed_kernel,
        out_shape=jax.ShapeDtypeStruct((Mp, Np), out_dtype),
        grid_spec=pltpu.PrefetchScalarGridSpec(
            num_scalar_prefetch=0,
            grid=(grid_m,),
            in_specs=[
                pl.BlockSpec((tile_m, Kp), lambda i: (i, 0)),   # activation row tile (streamed)
                pl.BlockSpec((Kp, Np), lambda i: (0, 0)),       # projection weight (resident)
                pl.BlockSpec((1, Np), lambda i: (0, 0)),        # f32 bias (resident)
            ],
            out_specs=pl.BlockSpec((tile_m, Np), lambda i: (i, 0)),
        ),
        compiler_params=pltpu.CompilerParams(
            dimension_semantics=("parallel",),      # row axis can be split across TensorCores
            vmem_limit_bytes=32 * 1024 * 1024,      # safe on v7x (64 MiB physical); ample for tile_m=1024
            allow_input_fusion=[True, False, False],  # let XLA fuse im2col/pad into the pallas input
        ),
    )(xp, w2d, b2d)

    return out[:M, :N].reshape(B, num_patches, N)


def init_params(key, channels, patch_size, num_hiddens, dtype=jnp.float32):
    """Deterministic init mirroring nn.Conv2d defaults (uniform +-1/sqrt(fan_in))."""
    kw, kb = jax.random.split(key)
    fan_in = channels * patch_size * patch_size
    lim = 1.0 / math.sqrt(fan_in)
    w = jax.random.uniform(kw, (num_hiddens, channels, patch_size, patch_size), dtype, -lim, lim)
    b = jax.random.uniform(kb, (num_hiddens,), dtype, -lim, lim)
    return w, b


def _reference(x, w, b, patch_size):
    """Independent reference: the actual strided convolution, then flatten(2).transpose(1,2)."""
    P = patch_size
    y = jax.lax.conv_general_dilated(
        x, w, window_strides=(P, P), padding="VALID",
        dimension_numbers=("NCHW", "OIHW", "NCHW"),
        precision=jax.lax.Precision.HIGHEST)
    y = y + b.reshape(1, -1, 1, 1)
    B, N, nh, nw = y.shape
    return y.reshape(B, N, nh * nw).transpose(0, 2, 1)


if __name__ == "__main__":
    key = jax.random.PRNGKey(0)
    kx, kp = jax.random.split(key)

    batch, channels = 2, 3
    image_size, patch_size, num_hiddens = 96, 16, 512   # module defaults -> 36 patches

    x = jax.random.normal(kx, (batch, channels, image_size, image_size), jnp.float32)
    w, b = init_params(kp, channels, patch_size, num_hiddens)

    num_patches = (image_size // patch_size) ** 2
    ref = _reference(x, w, b, patch_size)

    # f32 operand path (exact-ish vs the conv reference)
    out = patch_embedding(x, w, b, patch_size=patch_size)
    out = jax.block_until_ready(out)
    assert out.shape == (batch, num_patches, num_hiddens)
    assert jnp.allclose(out, ref, atol=1e-4, rtol=1e-4), "f32 path mismatch vs conv reference"

    # bf16 operand path (fast MXU mode; f32 accumulation) — looser tolerance vs the f32 reference
    out_bf16 = patch_embedding(x, w, b, patch_size=patch_size, compute_dtype=jnp.bfloat16)
    out_bf16 = jax.block_until_ready(out_bf16)
    assert out_bf16.shape == (batch, num_patches, num_hiddens)
    assert jnp.allclose(out_bf16, ref, atol=5e-2, rtol=5e-2), "bf16 path mismatch vs conv reference"

    print("KERNEL_OK")
</pallas_src>

<mosaic_0001>
module attributes {stable_mosaic.version = 11 : i64} {
  func.func @_patch_embed_kernel(%arg0: i32, %arg1: memref<40x768xf32, #tpu.memory_space<vmem>>, %arg2: memref<768x512xf32, #tpu.memory_space<vmem>>, %arg3: memref<1x512xf32, #tpu.memory_space<vmem>>, %arg4: memref<40x512xf32, #tpu.memory_space<vmem>>) attributes {dimension_semantics = [#tpu.dimension_semantics<parallel>], iteration_bounds = array<i64: 2>, scalar_prefetch = 0 : i64, scratch_operands = 0 : i64, tpu.core_type = #tpu.core_type<tc>, window_params = [{transform_indices = @transform_0, window_bounds = array<i64: 40, 768>}, {pipeline_mode = #tpu.pipeline_mode<synchronous>, transform_indices = @transform_1, window_bounds = array<i64: 768, 512>}, {pipeline_mode = #tpu.pipeline_mode<synchronous>, transform_indices = @transform_2, window_bounds = array<i64: 1, 512>}, {transform_indices = @transform_3, window_bounds = array<i64: 40, 512>}]} {
    %c0 = arith.constant 0 : index
    %c0_0 = arith.constant 0 : index
    %0 = vector.load %arg1[%c0, %c0_0] : memref<40x768xf32, #tpu.memory_space<vmem>>, vector<40x768xf32>
    %c0_1 = arith.constant 0 : index
    %c0_2 = arith.constant 0 : index
    %1 = vector.load %arg2[%c0_1, %c0_2] : memref<768x512xf32, #tpu.memory_space<vmem>>, vector<768x512xf32>
    %cst = arith.constant dense<0.000000e+00> : vector<40x512xf32>
    %2 = tpu.matmul %0, %1, %cst {dimension_numbers = #tpu.dot_dimension_numbers<[1], [0], [0], [1], [0, 0, 1, 1], [], []>} : vector<40x768xf32>, vector<768x512xf32>, vector<40x512xf32> -> vector<40x512xf32>
    %c0_3 = arith.constant 0 : index
    %c0_4 = arith.constant 0 : index
    %3 = vector.load %arg3[%c0_3, %c0_4] : memref<1x512xf32, #tpu.memory_space<vmem>>, vector<1x512xf32>
    %4 = vector.broadcast %3 : vector<1x512xf32> to vector<40x512xf32>
    %5 = arith.addf %2, %4 : vector<40x512xf32>
    %c0_5 = arith.constant 0 : index
    %c0_6 = arith.constant 0 : index
    %6 = vector.load %arg4[%c0_5, %c0_6] : memref<40x512xf32, #tpu.memory_space<vmem>>, vector<40x512xf32>
    tpu.vector_store %arg4[%c0_5, %c0_6], %5 {strides = array<i32>} : memref<40x512xf32, #tpu.memory_space<vmem>>, vector<40x512xf32>,
    return
  }
  func.func @transform_0(%arg0: i32) -> (i32, i32) {
    %c0_i32 = arith.constant 0 : i32
    %c0_i32_0 = arith.constant 0 : i32
    return %arg0, %c0_i32 : i32, i32
  }
  func.func @transform_1(%arg0: i32) -> (i32, i32) {
    %c0_i32 = arith.constant 0 : i32
    %c0_i32_0 = arith.constant 0 : i32
    %c0_i32_1 = arith.constant 0 : i32
    return %c0_i32, %c0_i32_0 : i32, i32
  }
  func.func @transform_2(%arg0: i32) -> (i32, i32) {
    %c0_i32 = arith.constant 0 : i32
    %c0_i32_0 = arith.constant 0 : i32
    %c0_i32_1 = arith.constant 0 : i32
    return %c0_i32, %c0_i32_0 : i32, i32
  }
  func.func @transform_3(%arg0: i32) -> (i32, i32) {
    %c0_i32 = arith.constant 0 : i32
    %c0_i32_0 = arith.constant 0 : i32
    return %arg0, %c0_i32 : i32, i32
  }
}

</mosaic_0001>

<bundles_post_ra>
// kernel: patch_embedding.2
= control target key start
LH: loop header
LB: loop body
LE: loop exit
PB: predicated region body
PF: predicated region fallthrough
CT: control target
= control target key end

     0   :  { %s1819_s17 = smov 0   ;;  %s3402_s0 = inlined_call_operand.vmem [shape: f32[768,512], index: 0, kind: input, shape index: {}]   ;;  %s3403_s1 = inlined_call_operand.vmem [shape: f32[1,512], index: 1, kind: input, shape index: {}]   ;;  %s3404_s2 = inlined_call_operand.vmem [shape: f32[72,768], index: 2, kind: input, shape index: {}]   ;;  %s3405_s3 = inlined_call_operand.<no memory space> [shape: f32[], index: 3, kind: input, shape index: {}]   ;;  %s3406_s4 = inlined_call_operand.vmem [shape: f32[80,512], index: 4, kind: output, shape index: {}]  }
   0x1   :  { %v1817_v0 = vstv %s3405_s3 }
   0x2 LB: > { %s1708_s18 = sadd.s32 4294967295, %s1787_s17   ;;  %p1712_p0 = scmp.ge.s32.totalorder %s1787_s17, 1  ;;  %s1787_s17 = sphi %s1819_s17, %s15_s17  }
   0x3   : > { %p151_p1 = scmp.lt.s32.totalorder %s1787_s17, 3 }
   0x5   : > { %p152_p2 = pnand %p1712_p0, %p151_p1 }
   0x6   : > { %s1907_s3 = smul.u32 (!%p152_p2), 5, %s1708_s18 }
   0x7   : > { %155 = sbr.rel (%p152_p2) target bundleno = 463 (0x1cf), region = 32 }
   0x8   : > { %p188_p3 = scmp.lt.s32.totalorder (!%p152_p2), %s1907_s3, 8  ;;  %s349_s27 = sadd.s32 (!%p152_p2), 4, %s1907_s3 }
   0x9   : > { %s2158_s7 = ssub.s32 (!%p152_p2), 8, %s349_s27  ;;  %p200_p5 = scmp.lt.s32.totalorder (!%p152_p2), %s1907_s3, 9 }
   0xa   : > { %p351_p4 = scmp.lt.s32.totalorder (!%p152_p2), %s2158_s7, 0 }
   0xc   : > { %v528_v1 = vld [vmem:[%s3402_s0 + $0x1e0] sm:$0xff]  ;;  %s1961_s18 = scalar_select %p188_p3, %s1907_s3, 8 }
   0xd   : > { %v656_v2 = vld [vmem:[%s3402_s0 + $0x5e0] sm:$0xff]  ;;  %862 = vmatpush.msra.mxu0 %v528_v1  ;;  %s2209_s6 = scalar_select %p351_p4, 0, 255 }
   0xe   : > { %v524_v3 = vld [vmem:[%s3402_s0 + $0x1c0] sm:$0xff]  ;;  %926 = vmatpush.msra.mxu2 %v656_v2  ;;  %s1748_s20 = smul.u32 48, %s1961_s18  ;;  %v529_v2 = vld [vmem:[%s3402_s0 + $0x1e8] sm:$0xff]  ;;  %s3410_s3 = smov (!%p200_p5, %s1907_s3), 9 }
   0xf   : > { %v592_v4 = vld [vmem:[%s3402_s0 + $0x3e0] sm:$0xff]  ;;  %863 = vmatpush.msra.mxu0 %v524_v3  ;;  %s1747_s24 = sshll.u32 %s3410_s3, 5 }
  0x10   : > { %v652_v5 = vld [vmem:[%s3402_s0 + $0x5c0] sm:$0xff]  ;;  %894 = vmatpush.msra.mxu1 %v592_v4  ;;  %s2015_s12 = scalar_lea.vmem %s3404_s2, %s1748_s20  ;;  %s3098_s10 = scalar_lea.vmem %s3406_s4, %s1747_s24 }
  0x11   : > { %v720_v6 = vld [vmem:[%s3402_s0 + $0x7e0] sm:$0xff]  ;;  %927 = vmatpush.msra.mxu2 %v652_v5  ;;  %v2033_v1 = vld [vmem:[%s2015_s12 + $0x10] sm:$0xff]  ;;  %v2045_v5 = vld [vmem:[%s2015_s12 + $0x8] sm:$0xff] }
  0x12   : > { %958 = vmatpush.msra.mxu3 %v720_v6  ;;  %v520_v7 = vld [vmem:[%s3402_s0 + $0x1a0] sm:$0xff]  ;;  %v2050_v6 = vld [vmem:[%s2015_s12 + $0x18] sm:$0xff] }
  0x13   : > { %v588_v8 = vld [vmem:[%s3402_s0 + $0x3c0] sm:$0xff]  ;;  %864 = vmatpush.msra.mxu0 %v520_v7 }
  0x14   : > { %v648_v9 = vld [vmem:[%s3402_s0 + $0x5a0] sm:$0xff]  ;;  %895 = vmatpush.msra.mxu1 %v588_v8  ;;  %v593_v8 = vld [vmem:[%s3402_s0 + $0x3e8] sm:$0xff] }
  0x15   : > { %v716_v10 = vld [vmem:[%s3402_s0 + $0x7c0] sm:$0xff]  ;;  %928 = vmatpush.msra.mxu2 %v648_v9  ;;  %v525_v9 = vld [vmem:[%s3402_s0 + $0x1c8] sm:$0xff] }
  0x16   : > { %v584_v11 = vld [vmem:[%s3402_s0 + $0x3a0] sm:$0xff]  ;;  %959 = vmatpush.msra.mxu3 %v716_v10 }
  0x17   : > { %v516_v12 = vld [vmem:[%s3402_s0 + $0x180] sm:$0xff]  ;;  %896 = vmatpush.msra.mxu1 %v584_v11 }
  0x18   : > { %v644_v13 = vld [vmem:[%s3402_s0 + $0x580] sm:$0xff]  ;;  %865 = vmatpush.msra.mxu0 %v516_v12  ;;  %v521_v12 = vld [vmem:[%s3402_s0 + $0x1a8] sm:$0xff] }
  0x19   : > { %v712_v14 = vld [vmem:[%s3402_s0 + $0x7a0] sm:$0xff]  ;;  %929 = vmatpush.msra.mxu2 %v644_v13  ;;  %v589_v13 = vld [vmem:[%s3402_s0 + $0x3c8] sm:$0xff] }
  0x1a   : > { %v580_v15 = vld [vmem:[%s3402_s0 + $0x380] sm:$0xff]  ;;  %960 = vmatpush.msra.mxu3 %v712_v14 }
  0x1b   : > { %v708_v16 = vld [vmem:[%s3402_s0 + $0x780] sm:$0xff]  ;;  %897 = vmatpush.msra.mxu1 %v580_v15 }
  0x1c   : > { %v512_v17 = vld [vmem:[%s3402_s0 + $0x160] sm:$0xff]  ;;  %961 = vmatpush.msra.mxu3 %v708_v16  ;;  %v585_v16 = vld [vmem:[%s3402_s0 + $0x3a8] sm:$0xff] }
  0x1d   : > { %v640_v18 = vld [vmem:[%s3402_s0 + $0x560] sm:$0xff]  ;;  %866 = vmatpush.msra.mxu0 %v512_v17  ;;  %v2085_v17 = vld [vmem:[%s2015_s12 + $0x30] sm:$0xff] }
  0x1e   : > { %v576_v19 = vld [vmem:[%s3402_s0 + $0x360] sm:$0xff]  ;;  %930 = vmatpush.msra.mxu2 %v640_v18 }
  0x1f   : > { %v704_v20 = vld [vmem:[%s3402_s0 + $0x760] sm:$0xff]  ;;  %898 = vmatpush.msra.mxu1 %v576_v19 }
  0x20   : > { %v508_v21 = vld [vmem:[%s3402_s0 + $0x140] sm:$0xff]  ;;  %962 = vmatpush.msra.mxu3 %v704_v20  ;;  %v517_v20 = vld [vmem:[%s3402_s0 + $0x188] sm:$0xff] }
  0x21   : > { %v636_v22 = vld [vmem:[%s3402_s0 + $0x540] sm:$0xff]  ;;  %867 = vmatpush.msra.mxu0 %v508_v21  ;;  %v2097_v21 = vld [vmem:[%s2015_s12 + $0x38] sm:$0xff] }
  0x22   : > { %v572_v23 = vld [vmem:[%s3402_s0 + $0x340] sm:$0xff]  ;;  %931 = vmatpush.msra.mxu2 %v636_v22  ;;  %v2101_v22 = vld [vmem:[%s2015_s12 + $0x48] sm:$0xff] }
  0x23   : > { %v700_v24 = vld [vmem:[%s3402_s0 + $0x740] sm:$0xff]  ;;  %899 = vmatpush.msra.mxu1 %v572_v23 }
  0x24   : > { %v504_v25 = vld [vmem:[%s3402_s0 + $0x120] sm:$0xff]  ;;  %963 = vmatpush.msra.mxu3 %v700_v24  ;;  %v513_v24 = vld [vmem:[%s3402_s0 + $0x168] sm:$0xff] }
  0x25   : > { %v632_v26 = vld [vmem:[%s3402_s0 + $0x520] sm:$0xff]  ;;  %868 = vmatpush.msra.mxu0 %v504_v25  ;;  %v581_v25 = vld [vmem:[%s3402_s0 + $0x388] sm:$0xff] }
  0x26   : > { %v568_v27 = vld [vmem:[%s3402_s0 + $0x320] sm:$0xff]  ;;  %932 = vmatpush.msra.mxu2 %v632_v26 }
  0x27   : > { %v696_v28 = vld [vmem:[%s3402_s0 + $0x720] sm:$0xff]  ;;  %900 = vmatpush.msra.mxu1 %v568_v27 }
  0x28   : > { %v500_v29 = vld [vmem:[%s3402_s0 + $0x100] sm:$0xff]  ;;  %964 = vmatpush.msra.mxu3 %v696_v28  ;;  %v577_v28 = vld [vmem:[%s3402_s0 + $0x368] sm:$0xff] }
  0x29   : > { %v628_v30 = vld [vmem:[%s3402_s0 + $0x500] sm:$0xff]  ;;  %869 = vmatpush.msra.mxu0 %v500_v29  ;;  %v509_v29 = vld [vmem:[%s3402_s0 + $0x148] sm:$0xff] }
  0x2a   : > { %v564_v31 = vld [vmem:[%s3402_s0 + $0x300] sm:$0xff]  ;;  %933 = vmatpush.msra.mxu2 %v628_v30 }
  0x2b   : > { %v692_v32 = vld [vmem:[%s3402_s0 + $0x700] sm:$0xff]  ;;  %901 = vmatpush.msra.mxu1 %v564_v31 }
  0x2c   : > { %v496_v33 = vld [vmem:[%s3402_s0 + $0xe0] sm:$0xff]  ;;  %965 = vmatpush.msra.mxu3 %v692_v32  ;;  %v505_v32 = vld [vmem:[%s3402_s0 + $0x128] sm:$0xff] }
  0x2d   : > { %v624_v34 = vld [vmem:[%s3402_s0 + $0x4e0] sm:$0xff]  ;;  %870 = vmatpush.msra.mxu0 %v496_v33  ;;  %v573_v33 = vld [vmem:[%s3402_s0 + $0x348] sm:$0xff] }
  0x2e   : > { %v560_v35 = vld [vmem:[%s3402_s0 + $0x2e0] sm:$0xff]  ;;  %934 = vmatpush.msra.mxu2 %v624_v34 }
  0x2f   : > { %v688_v36 = vld [vmem:[%s3402_s0 + $0x6e0] sm:$0xff]  ;;  %902 = vmatpush.msra.mxu1 %v560_v35  ;;  %v2144_v35 = vld [vmem:[%s2015_s12 + $0x70] sm:$0xff] }
  0x30   : > { %v492_v37 = vld [vmem:[%s3402_s0 + $0xc0] sm:$0xff]  ;;  %966 = vmatpush.msra.mxu3 %v688_v36 }
  0x31   : > { %v620_v38 = vld [vmem:[%s3402_s0 + $0x4c0] sm:$0xff]  ;;  %871 = vmatpush.msra.mxu0 %v492_v37 }
  0x32   : > { %v556_v39 = vld [vmem:[%s3402_s0 + $0x2c0] sm:$0xff]  ;;  %935 = vmatpush.msra.mxu2 %v620_v38  ;;  %v569_v38 = vld [vmem:[%s3402_s0 + $0x328] sm:$0xff] }
  0x33   : > { %v684_v40 = vld [vmem:[%s3402_s0 + $0x6c0] sm:$0xff]  ;;  %903 = vmatpush.msra.mxu1 %v556_v39  ;;  %v2156_v39 = vld [vmem:[%s2015_s12 + $0x68] sm:$0xff] }
  0x34   : > { %v488_v41 = vld [vmem:[%s3402_s0 + $0xa0] sm:$0xff]  ;;  %967 = vmatpush.msra.mxu3 %v684_v40  ;;  %v2163_v40 = vld [vmem:[%s2015_s12 + $0x78] sm:$0xff] }
  0x35   : > { %v616_v42 = vld [vmem:[%s3402_s0 + $0x4a0] sm:$0xff]  ;;  %872 = vmatpush.msra.mxu0 %v488_v41  ;;  %v501_v41 = vld [vmem:[%s3402_s0 + $0x108] sm:$0xff] }
  0x36   : > { %v552_v43 = vld [vmem:[%s3402_s0 + $0x2a0] sm:$0xff]  ;;  %936 = vmatpush.msra.mxu2 %v616_v42 }
  0x37   : > { %v680_v44 = vld [vmem:[%s3402_s0 + $0x6a0] sm:$0xff]  ;;  %904 = vmatpush.msra.mxu1 %v552_v43 }
  0x38   : > { %v484_v45 = vld [vmem:[%s3402_s0 + $0x80] sm:$0xff]  ;;  %968 = vmatpush.msra.mxu3 %v680_v44  ;;  %v497_v44 = vld [vmem:[%s3402_s0 + $0xe8] sm:$0xff] }
  0x39   : > { %v612_v46 = vld [vmem:[%s3402_s0 + $0x480] sm:$0xff]  ;;  %873 = vmatpush.msra.mxu0 %v484_v45  ;;  %v565_v45 = vld [vmem:[%s3402_s0 + $0x308] sm:$0xff] }
  0x3a   : > { %v548_v47 = vld [vmem:[%s3402_s0 + $0x280] sm:$0xff]  ;;  %937 = vmatpush.msra.mxu2 %v612_v46 }
  0x3b   : > { %v676_v48 = vld [vmem:[%s3402_s0 + $0x680] sm:$0xff]  ;;  %905 = vmatpush.msra.mxu1 %v548_v47 }
  0x3c   : > { %v480_v49 = vld [vmem:[%s3402_s0 + $0x60] sm:$0xff]  ;;  %969 = vmatpush.msra.mxu3 %v676_v48  ;;  %v561_v48 = vld [vmem:[%s3402_s0 + $0x2e8] sm:$0xff] }
  0x3d   : > { %v608_v50 = vld [vmem:[%s3402_s0 + $0x460] sm:$0xff]  ;;  %874 = vmatpush.msra.mxu0 %v480_v49  ;;  %v493_v49 = vld [vmem:[%s3402_s0 + $0xc8] sm:$0xff] }
  0x3e   : > { %v544_v51 = vld [vmem:[%s3402_s0 + $0x260] sm:$0xff]  ;;  %938 = vmatpush.msra.mxu2 %v608_v50  ;;  %v2196_v50 = vld [vmem:[%s2015_s12 + $0x90] sm:$0xff] }
  0x3f   : > { %v672_v52 = vld [vmem:[%s3402_s0 + $0x660] sm:$0xff]  ;;  %906 = vmatpush.msra.mxu1 %v544_v51 }
  0x40   : > { %v476_v53 = vld [vmem:[%s3402_s0 + $0x40] sm:$0xff]  ;;  %970 = vmatpush.msra.mxu3 %v672_v52 }
  0x41   : > { %v604_v54 = vld [vmem:[%s3402_s0 + $0x440] sm:$0xff]  ;;  %875 = vmatpush.msra.mxu0 %v476_v53 }
  0x42   : > { %v540_v55 = vld [vmem:[%s3402_s0 + $0x240] sm:$0xff]  ;;  %939 = vmatpush.msra.mxu2 %v604_v54  ;;  %v489_v54 = vld [vmem:[%s3402_s0 + $0xa8] sm:$0xff] }
  0x43   : > { %v668_v56 = vld [vmem:[%s3402_s0 + $0x640] sm:$0xff]  ;;  %907 = vmatpush.msra.mxu1 %v540_v55  ;;  %v557_v55 = vld [vmem:[%s3402_s0 + $0x2c8] sm:$0xff] }
  0x44   : > { %v472_v57 = vld [vmem:[%s3402_s0 + $0x20] sm:$0xff]  ;;  %971 = vmatpush.msra.mxu3 %v668_v56  ;;  %v356_v56 = vstv %s2158_s7 }
  0x45   : > { %v600_v58 = vld [vmem:[%s3402_s0 + $0x420] sm:$0xff]  ;;  %876 = vmatpush.msra.mxu0 %v472_v57  ;;  %v2221_v57 = vld [vmem:[%s2015_s12 + $0x98] sm:$0xff]  ;;  %vm2240_vm0 = vcmp.lt.s32.totalorder %v356_v56, 0  ;;  %v2380_v56 = vld [vmem:[%s2015_s12 + $0x50] sm:$0xff] }
  0x46   : > { %v536_v59 = vld [vmem:[%s3402_s0 + $0x220] sm:$0xff]  ;;  %940 = vmatpush.msra.mxu2 %v600_v58  ;;  %v2224_v58 = vld [vmem:[%s2015_s12 + $0xa8] sm:$0xff] }
  0x47   : > { %v664_v60 = vld [vmem:[%s3402_s0 + $0x620] sm:$0xff]  ;;  %908 = vmatpush.msra.mxu1 %v536_v59 }
  0x48   : > { %v468_v61 = vld [vmem:[%s3402_s0] sm:$0xff]  ;;  %972 = vmatpush.msra.mxu3 %v664_v60 }
  0x49   : > { %v596_v62 = vld [vmem:[%s3402_s0 + $0x400] sm:$0xff]  ;;  %877 = vmatpush.msra.mxu0 %v468_v61  ;;  %v553_v61 = vld [vmem:[%s3402_s0 + $0x2a8] sm:$0xff] }
  0x4a   : > { %v2030_v63 = vld [vmem:[%s2015_s12] sm:$0xff]  ;;  %941 = vmatpush.msra.mxu2 %v596_v62  ;;  %v485_v62 = vld [vmem:[%s3402_s0 + $0x88] sm:$0xff] }
  0x4b   : > { %v532_v3 = vld [vmem:[%s3402_s0 + $0x200] sm:$0xff]  ;;  %878 = vmatmul.f32.vlgmr.msra.gmra.mxu0 %v2030_v63  ;;  %942 = vmatmul.f32.vlgmr.msra.gmra.mxu2 %v2033_v1 }
  0x4c   : > { %v660_v4 = vld [vmem:[%s3402_s0 + $0x600] sm:$0xff]  ;;  %1054 = vmatpush.msrb.mxu2 %v529_v2  ;;  %909 = vmatpush.msra.mxu1 %v532_v3  ;;  %v797_v3 = vld [vmem:[%s3402_s0 + $0xa48] sm:$0xff] }
  0x4d   : > { %v784_v7 = vld [vmem:[%s3402_s0 + $0x9e0] sm:$0xff]  ;;  %973 = vmatpush.msra.mxu3 %v660_v4  ;;  %910 = vmatmul.f32.vlgmr.msra.gmra.mxu1 %v2045_v5  ;;  %v1741_v4 = vld [vmem:[%s2015_s12 + $0xd0] sm:%s2209_s6] }
  0x4e   : > { %v848_v10 = vld [vmem:[%s3402_s0 + $0xbe0] sm:$0xff]  ;;  %974 = vmatmul.f32.vlgmr.msra.gmra.mxu3 %v2050_v6  ;;  %990 = vmatpush.msrb.mxu0 %v784_v7 }
  0x4f   : > { %v780_v11 = vld [vmem:[%s3402_s0 + $0x9c0] sm:$0xff]  ;;  %1086 = vmatpush.msrb.mxu3 %v593_v8  ;;  %1055 = vmatpush.msrb.mxu2 %v525_v9  ;;  %v481_v9 = vld [vmem:[%s3402_s0 + $0x68] sm:$0xff] }
  0x50   : > { %v776_v14 = vld [vmem:[%s3402_s0 + $0x9a0] sm:$0xff]  ;;  %1022 = vmatpush.msrb.mxu1 %v848_v10  ;;  %991 = vmatpush.msrb.mxu0 %v780_v11  ;;  %v549_v10 = vld [vmem:[%s3402_s0 + $0x288] sm:$0xff] }
  0x51   : > { %v844_v15 = vld [vmem:[%s3402_s0 + $0xbc0] sm:$0xff]  ;;  %1056 = vmatpush.msrb.mxu2 %v521_v12  ;;  %1087 = vmatpush.msrb.mxu3 %v589_v13  ;;  %v2268_v12 = vsel %vm2240_vm0, %v1817_v0, %v1741_v4  ;;  %v1740_v13 = vld [vmem:[%s2015_s12 + $0xc8] sm:%s2209_s6] }
  0x52   : > { %v2088_v18 = vld [vmem:[%s2015_s12 + $0x40] sm:$0xff]  ;;  %992 = vmatpush.msrb.mxu0 %v776_v14  ;;  %1023 = vmatpush.msrb.mxu1 %v844_v15  ;;  %v1742_v14 = vld [vmem:[%s2015_s12 + $0xd8] sm:%s2209_s6]  ;;  %v837_v4 = vld [vmem:[%s3402_s0 + $0xb88] sm:$0xff] }
  0x53   : > { %v840_v19 = vld [vmem:[%s3402_s0 + $0xba0] sm:$0xff]  ;;  %1088 = vmatpush.msrb.mxu3 %v585_v16  ;;  %881 = vmatmul.f32.gmra.mxu0 %v2085_v17 }
  0x54   : > { %v772_v23 = vld [vmem:[%s3402_s0 + $0x980] sm:$0xff]  ;;  %945 = vmatmul.f32.gmra.mxu2 %v2088_v18  ;;  %1024 = vmatpush.msrb.mxu1 %v840_v19  ;;  %v545_v19 = vld [vmem:[%s3402_s0 + $0x268] sm:$0xff] }
  0x55   : > { %1057 = vmatpush.msrb.mxu2 %v517_v20  ;;  %913 = vmatmul.f32.gmra.mxu1 %v2097_v21  ;;  %v768_v26 = vld [vmem:[%s3402_s0 + $0x960] sm:$0xff]  ;;  %v477_v20 = vld [vmem:[%s3402_s0 + $0x48] sm:$0xff] }
  0x56   : > { %v836_v27 = vld [vmem:[%s3402_s0 + $0xb80] sm:$0xff]  ;;  %977 = vmatmul.f32.gmra.mxu3 %v2101_v22  ;;  %993 = vmatpush.msrb.mxu0 %v772_v23  ;;  %v2291_v23 = vsel %vm2240_vm0, %v1817_v0, %v1740_v13  ;;  %v705_v13 = vld [vmem:[%s3402_s0 + $0x768] sm:$0xff] }
  0x57   : > { %1058 = vmatpush.msrb.mxu2 %v513_v24  ;;  %1089 = vmatpush.msrb.mxu3 %v581_v25  ;;  %v832_v30 = vld [vmem:[%s3402_s0 + $0xb60] sm:$0xff]  ;;  %v2296_v24 = vsel %vm2240_vm0, %v1817_v0, %v1742_v14  ;;  %v637_v14 = vld [vmem:[%s3402_s0 + $0x548] sm:$0xff] }
  0x58   : > { %v764_v31 = vld [vmem:[%s3402_s0 + $0x940] sm:$0xff]  ;;  %994 = vmatpush.msrb.mxu0 %v768_v26  ;;  %1025 = vmatpush.msrb.mxu1 %v836_v27  ;;  %v473_v27 = vld [vmem:[%s3402_s0 + $0x28] sm:$0xff] }
  0x59   : > { %1090 = vmatpush.msrb.mxu3 %v577_v28  ;;  %1059 = vmatpush.msrb.mxu2 %v509_v29  ;;  %v2141_v34 = vld [vmem:[%s2015_s12 + $0x60] sm:$0xff]  ;;  %v541_v28 = vld [vmem:[%s3402_s0 + $0x248] sm:$0xff] }
  0x5a   : > { %1026 = vmatpush.msrb.mxu1 %v832_v30  ;;  %995 = vmatpush.msrb.mxu0 %v764_v31  ;;  %v760_v36 = vld [vmem:[%s3402_s0 + $0x920] sm:$0xff]  ;;  %v537_v31 = vld [vmem:[%s3402_s0 + $0x228] sm:$0xff] }
  0x5b   : > { %v828_v37 = vld [vmem:[%s3402_s0 + $0xb40] sm:$0xff]  ;;  %1060 = vmatpush.msrb.mxu2 %v505_v32  ;;  %1091 = vmatpush.msrb.mxu3 %v573_v33  ;;  %v469_v32 = vld [vmem:[%s3402_s0 + $0x8] sm:$0xff] }
  0x5c   : > { %884 = vmatmul.f32.gmra.mxu0 %v2141_v34  ;;  %948 = vmatmul.f32.gmra.mxu2 %v2144_v35  ;;  %v824_v42 = vld [vmem:[%s3402_s0 + $0xb20] sm:$0xff] }
  0x5d   : > { %996 = vmatpush.msrb.mxu0 %v760_v36  ;;  %1027 = vmatpush.msrb.mxu1 %v828_v37  ;;  %v756_v43 = vld [vmem:[%s3402_s0 + $0x900] sm:$0xff] }
  0x5e   : > { %1092 = vmatpush.msrb.mxu3 %v569_v38  ;;  %916 = vmatmul.f32.gmra.mxu1 %v2156_v39  ;;  %v752_v46 = vld [vmem:[%s3402_s0 + $0x8e0] sm:$0xff]  ;;  %v533_v38 = vld [vmem:[%s3402_s0 + $0x208] sm:$0xff] }
  0x5f   : > { %980 = vmatmul.f32.gmra.mxu3 %v2163_v40  ;;  %1061 = vmatpush.msrb.mxu2 %v501_v41  ;;  %v820_v47 = vld [vmem:[%s3402_s0 + $0xb00] sm:$0xff]  ;;  %v785_v41 = vld [vmem:[%s3402_s0 + $0x9e8] sm:$0xff] }
  0x60   : > { %1028 = vmatpush.msrb.mxu1 %v824_v42  ;;  %997 = vmatpush.msrb.mxu0 %v756_v43  ;;  %v2199_v51 = vld [vmem:[%s2015_s12 + $0xa0] sm:$0xff]  ;;  %v2345_v43 = vld [vmem:[%s2015_s12 + $0x28] sm:$0xff] }
  0x61   : > { %1062 = vmatpush.msrb.mxu2 %v497_v44  ;;  %1093 = vmatpush.msrb.mxu3 %v565_v45  ;;  %v816_v52 = vld [vmem:[%s3402_s0 + $0xae0] sm:$0xff]  ;;  %v657_v44 = vld [vmem:[%s3402_s0 + $0x5e8] sm:$0xff] }
  0x62   : > { %998 = vmatpush.msrb.mxu0 %v752_v46  ;;  %1029 = vmatpush.msrb.mxu1 %v820_v47  ;;  %v748_v53 = vld [vmem:[%s3402_s0 + $0x8c0] sm:$0xff]  ;;  %v849_v45 = vld [vmem:[%s3402_s0 + $0xbe8] sm:$0xff] }
  0x63   : > { %1094 = vmatpush.msrb.mxu3 %v561_v48  ;;  %1063 = vmatpush.msrb.mxu2 %v493_v49  ;;  %v744_v59 = vld [vmem:[%s3402_s0 + $0x8a0] sm:$0xff]  ;;  %v781_v46 = vld [vmem:[%s3402_s0 + $0x9c8] sm:$0xff] }
  0x64   : > { %887 = vmatmul.f32.gmra.mxu0 %v2196_v50  ;;  %951 = vmatmul.f32.gmra.mxu2 %v2199_v51  ;;  %v812_v60 = vld [vmem:[%s3402_s0 + $0xac0] sm:$0xff]  ;;  %v721_v47 = vld [vmem:[%s3402_s0 + $0x7e8] sm:$0xff] }
  0x65   : > { %1030 = vmatpush.msrb.mxu1 %v816_v52  ;;  %999 = vmatpush.msrb.mxu0 %v748_v53  ;;  %v1739_v2 = vld [vmem:[%s2015_s12 + $0xc0] sm:%s2209_s6]  ;;  %v653_v48 = vld [vmem:[%s3402_s0 + $0x5c8] sm:$0xff] }
  0x66   : > { %1064 = vmatpush.msrb.mxu2 %v489_v54  ;;  %1095 = vmatpush.msrb.mxu3 %v557_v55  ;;  %v808_v7 = vld [vmem:[%s3402_s0 + $0xaa0] sm:$0xff]  ;;  %v2263_v11 = vsel %vm2240_vm0, %v1817_v0, %v1739_v2  ;;  %v777_v49 = vld [vmem:[%s3402_s0 + $0x9a8] sm:$0xff] }
  0x67   : > { %919 = vmatmul.f32.gmra.mxu1 %v2221_v57  ;;  %983 = vmatmul.f32.gmra.mxu3 %v2224_v58  ;;  %v740_v8 = vld [vmem:[%s3402_s0 + $0x880] sm:$0xff]  ;;  %v845_v52 = vld [vmem:[%s3402_s0 + $0xbc8] sm:$0xff] }
  0x68   : > { %1000 = vmatpush.msrb.mxu0 %v744_v59  ;;  %1031 = vmatpush.msrb.mxu1 %v812_v60  ;;  %v736_v15 = vld [vmem:[%s3402_s0 + $0x860] sm:$0xff]  ;;  %v649_v53 = vld [vmem:[%s3402_s0 + $0x5a8] sm:$0xff] }
  0x69   : > { %1096 = vmatpush.msrb.mxu3 %v553_v61  ;;  %1065 = vmatpush.msrb.mxu2 %v485_v62  ;;  %v804_v16 = vld [vmem:[%s3402_s0 + $0xa80] sm:$0xff]  ;;  %v717_v54 = vld [vmem:[%s3402_s0 + $0x7c8] sm:$0xff]  ;;  %v2390_v61 = vld [vmem:[%s2015_s12 + $0x58] sm:$0xff] }
  0x6a   : > { %1032 = vmatpush.msrb.mxu1 %v808_v7  ;;  %1001 = vmatpush.msrb.mxu0 %v740_v8  ;;  %v800_v25 = vld [vmem:[%s3402_s0 + $0xa60] sm:$0xff]  ;;  %v841_v55 = vld [vmem:[%s3402_s0 + $0xba8] sm:$0xff] }
  0x6b   : > { %1066 = vmatpush.msrb.mxu2 %v481_v9  ;;  %1097 = vmatpush.msrb.mxu3 %v549_v10  ;;  %v732_v26 = vld [vmem:[%s3402_s0 + $0x840] sm:$0xff]  ;;  %v713_v59 = vld [vmem:[%s3402_s0 + $0x7a8] sm:$0xff] }
  0x6c   : > { %890 = vmatmul.f32.gmra.mxu0 %v2263_v11  ;;  %954 = vmatmul.f32.gmra.mxu2 %v2268_v12  ;;  %v728_v29 = vld [vmem:[%s3402_s0 + $0x820] sm:$0xff]  ;;  %v773_v60 = vld [vmem:[%s3402_s0 + $0x988] sm:$0xff] }
  0x6d   : > { %1002 = vmatpush.msrb.mxu0 %v736_v15  ;;  %1033 = vmatpush.msrb.mxu1 %v804_v16  ;;  %v796_v30 = vld [vmem:[%s3402_s0 + $0xa40] sm:$0xff]  ;;  %v645_v62 = vld [vmem:[%s3402_s0 + $0x588] sm:$0xff] }
  0x6e   : > { %1098 = vmatpush.msrb.mxu3 %v545_v19  ;;  %1067 = vmatpush.msrb.mxu2 %v477_v20  ;;  %v724_v33 = vld [vmem:[%s3402_s0 + $0x800] sm:$0xff]  ;;  %v769_v2 = vld [vmem:[%s3402_s0 + $0x968] sm:$0xff] }
  0x6f   : > { %922 = vmatmul.f32.gmra.mxu1 %v2291_v23  ;;  %986 = vmatmul.f32.gmra.mxu3 %v2296_v24  ;;  %v792_v36 = vld [vmem:[%s3402_s0 + $0xa20] sm:$0xff]  ;;  %v641_v7 = vld [vmem:[%s3402_s0 + $0x568] sm:$0xff] }
  0x70   : > { %1034 = vmatpush.msrb.mxu1 %v800_v25  ;;  %1003 = vmatpush.msrb.mxu0 %v732_v26  ;;  %v2331_v37 = vld [vmem:[%s2015_s12 + $0x20] sm:$0xff]  ;;  %v709_v8 = vld [vmem:[%s3402_s0 + $0x788] sm:$0xff] }
  0x71   : > { %1068 = vmatpush.msrb.mxu2 %v473_v27  ;;  %1099 = vmatpush.msrb.mxu3 %v541_v28  ;;  %v788_v42 = vld [vmem:[%s3402_s0 + $0xa00] sm:$0xff]  ;;  %v833_v9 = vld [vmem:[%s3402_s0 + $0xb68] sm:$0xff] }
  0x72   : > { %1004 = vmatpush.msrb.mxu0 %v728_v29  ;;  %1035 = vmatpush.msrb.mxu1 %v796_v30  ;;  %v765_v10 = vld [vmem:[%s3402_s0 + $0x948] sm:$0xff]  ;;  %v2429_v19 = vld [vmem:[%s2015_s12 + $0x80] sm:$0xff] }
  0x73   : > { %1100 = vmatpush.msrb.mxu3 %v537_v31  ;;  %1069 = vmatpush.msrb.mxu2 %v469_v32  ;;  %v761_v15 = vld [vmem:[%s3402_s0 + $0x928] sm:$0xff] }
  0x74   : > { %1005 = vmatpush.msrb.mxu0 %v724_v33  ;;  %1036 = vmatpush.msrb.mxu1 %v792_v36  ;;  %v829_v16 = vld [vmem:[%s3402_s0 + $0xb48] sm:$0xff] }
  0x75   : > { %1006 = vmatmul.f32.vlgmr.msrb.gmra.mxu0 %v2331_v37  ;;  %1070 = vmatmul.f32.vlgmr.msrb.gmra.mxu2 %v2030_v63  ;;  %v633_v20 = vld [vmem:[%s3402_s0 + $0x528] sm:$0xff] }
  0x76   : > { %1101 = vmatpush.msrb.mxu3 %v533_v38  ;;  %1182 = vmatpush.msra.mxu2 %v785_v41  ;;  %v701_v25 = vld [vmem:[%s3402_s0 + $0x748] sm:$0xff] }
  0x77   : > { %1037 = vmatpush.msrb.mxu1 %v788_v42  ;;  %1102 = vmatmul.f32.vlgmr.msrb.gmra.mxu3 %v2045_v5  ;;  %v825_v26 = vld [vmem:[%s3402_s0 + $0xb28] sm:$0xff]  ;;  %v2475_v42 = vld [vmem:[%s2015_s12 + $0xb0] sm:$0xff] }
  0x78   : > { %1038 = vmatmul.f32.vlgmr.msrb.gmra.mxu1 %v2345_v43  ;;  %1118 = vmatpush.msra.mxu0 %v657_v44  ;;  %v2441_v27 = vld [vmem:[%s2015_s12 + $0x88] sm:$0xff] }
  0x79   : > { %1214 = vmatpush.msra.mxu3 %v849_v45  ;;  %1183 = vmatpush.msra.mxu2 %v781_v46  ;;  %v757_v28 = vld [vmem:[%s3402_s0 + $0x908] sm:$0xff] }
  0x7a   : > { %1150 = vmatpush.msra.mxu1 %v721_v47  ;;  %1119 = vmatpush.msra.mxu0 %v653_v48  ;;  %v697_v29 = vld [vmem:[%s3402_s0 + $0x728] sm:$0xff]  ;;  %v2492_v48 = vld [vmem:[%s2015_s12 + $0xb8] sm:$0xff] }
  0x7b   : > { %1184 = vmatpush.msra.mxu2 %v777_v49  ;;  %1215 = vmatpush.msra.mxu3 %v845_v52  ;;  %v629_v30 = vld [vmem:[%s3402_s0 + $0x508] sm:$0xff] }
  0x7c   : > { %1120 = vmatpush.msra.mxu0 %v649_v53  ;;  %1151 = vmatpush.msra.mxu1 %v717_v54  ;;  %v753_v31 = vld [vmem:[%s3402_s0 + $0x8e8] sm:$0xff] }
  0x7d   : > { %1216 = vmatpush.msra.mxu3 %v841_v55  ;;  %1009 = vmatmul.f32.gmra.mxu0 %v2380_v56  ;;  %v821_v32 = vld [vmem:[%s3402_s0 + $0xb08] sm:$0xff]  ;;  %v1743_v55 = vld [vmem:[%s2015_s12 + $0xe0] sm:%s2209_s6] }
  0x7e   : > { %1073 = vmatmul.f32.gmra.mxu2 %v2085_v17  ;;  %1152 = vmatpush.msra.mxu1 %v713_v59  ;;  %v625_v33 = vld [vmem:[%s3402_s0 + $0x4e8] sm:$0xff] }
  0x7f   : > { %1185 = vmatpush.msra.mxu2 %v773_v60  ;;  %1105 = vmatmul.f32.gmra.mxu3 %v2097_v21  ;;  %v693_v36 = vld [vmem:[%s3402_s0 + $0x708] sm:$0xff] }
  0x80   : > { %1041 = vmatmul.f32.gmra.mxu1 %v2390_v61  ;;  %1121 = vmatpush.msra.mxu0 %v645_v62  ;;  %v817_v38 = vld [vmem:[%s3402_s0 + $0xae8] sm:$0xff] }
  0x81   : > { %1186 = vmatpush.msra.mxu2 %v769_v2  ;;  %1217 = vmatpush.msra.mxu3 %v837_v4  ;;  %v749_v41 = vld [vmem:[%s3402_s0 + $0x8c8] sm:$0xff]  ;;  %v2525_v4 = vsel %vm2240_vm0, %v1817_v0, %v1743_v55  ;;  %v586_v55 = vld [vmem:[%s3402_s0 + $0x3b0] sm:$0xff] }
  0x82   : > { %1122 = vmatpush.msra.mxu0 %v641_v7  ;;  %1153 = vmatpush.msra.mxu1 %v709_v8  ;;  %v689_v44 = vld [vmem:[%s3402_s0 + $0x6e8] sm:$0xff] }
  0x83   : > { %1218 = vmatpush.msra.mxu3 %v833_v9  ;;  %1187 = vmatpush.msra.mxu2 %v765_v10  ;;  %v621_v45 = vld [vmem:[%s3402_s0 + $0x4c8] sm:$0xff] }
  0x84   : > { %1154 = vmatpush.msra.mxu1 %v705_v13  ;;  %1123 = vmatpush.msra.mxu0 %v637_v14  ;;  %v745_v46 = vld [vmem:[%s3402_s0 + $0x8a8] sm:$0xff] }
  0x85   : > { %1188 = vmatpush.msra.mxu2 %v761_v15  ;;  %1219 = vmatpush.msra.mxu3 %v829_v16  ;;  %v813_v47 = vld [vmem:[%s3402_s0 + $0xac8] sm:$0xff] }
  0x86   : > { %1012 = vmatmul.f32.gmra.mxu0 %v2429_v19  ;;  %1076 = vmatmul.f32.gmra.mxu2 %v2141_v34  ;;  %v617_v49 = vld [vmem:[%s3402_s0 + $0x4a8] sm:$0xff] }
  0x87   : > { %1124 = vmatpush.msra.mxu0 %v633_v20  ;;  %1155 = vmatpush.msra.mxu1 %v701_v25  ;;  %v685_v52 = vld [vmem:[%s3402_s0 + $0x6c8] sm:$0xff] }
  0x88   : > { %1220 = vmatpush.msra.mxu3 %v825_v26  ;;  %1044 = vmatmul.f32.gmra.mxu1 %v2441_v27  ;;  %v809_v53 = vld [vmem:[%s3402_s0 + $0xaa8] sm:$0xff] }
  0x89   : > { %1108 = vmatmul.f32.gmra.mxu3 %v2156_v39  ;;  %1189 = vmatpush.msra.mxu2 %v757_v28  ;;  %v741_v54 = vld [vmem:[%s3402_s0 + $0x888] sm:$0xff] }
  0x8a   : > { %1156 = vmatpush.msra.mxu1 %v697_v29  ;;  %1125 = vmatpush.msra.mxu0 %v629_v30  ;;  %v681_v59 = vld [vmem:[%s3402_s0 + $0x6a8] sm:$0xff] }
  0x8b   : > { %1190 = vmatpush.msra.mxu2 %v753_v31  ;;  %1221 = vmatpush.msra.mxu3 %v821_v32  ;;  %v613_v60 = vld [vmem:[%s3402_s0 + $0x488] sm:$0xff] }
  0x8c   : > { %1126 = vmatpush.msra.mxu0 %v625_v33  ;;  %1157 = vmatpush.msra.mxu1 %v693_v36  ;;  %v737_v62 = vld [vmem:[%s3402_s0 + $0x868] sm:$0xff]  ;;  %v658_v33 = vld [vmem:[%s3402_s0 + $0x5f0] sm:$0xff] }
  0x8d   : > { %1222 = vmatpush.msra.mxu3 %v817_v38  ;;  %1191 = vmatpush.msra.mxu2 %v749_v41  ;;  %v805_v2 = vld [vmem:[%s3402_s0 + $0xa88] sm:$0xff]  ;;  %v530_v38 = vld [vmem:[%s3402_s0 + $0x1f0] sm:$0xff] }
  0x8e   : > { %1015 = vmatmul.f32.gmra.mxu0 %v2475_v42  ;;  %1079 = vmatmul.f32.gmra.mxu2 %v2196_v50  ;;  %v1744_v7 = vld [vmem:[%s2015_s12 + $0xe8] sm:%s2209_s6]  ;;  %v722_v41 = vld [vmem:[%s3402_s0 + $0x7f0] sm:$0xff] }
  0x8f   : > { %1158 = vmatpush.msra.mxu1 %v689_v44  ;;  %1127 = vmatpush.msra.mxu0 %v621_v45  ;;  %v609_v8 = vld [vmem:[%s3402_s0 + $0x468] sm:$0xff]  ;;  %v2546_v14 = vsel %vm2240_vm0, %v1817_v0, %v1744_v7  ;;  %v654_v44 = vld [vmem:[%s3402_s0 + $0x5d0] sm:$0xff] }
  0x90   : > { %1192 = vmatpush.msra.mxu2 %v745_v46  ;;  %1223 = vmatpush.msra.mxu3 %v813_v47  ;;  %v677_v9 = vld [vmem:[%s3402_s0 + $0x688] sm:$0xff]  ;;  %v594_v45 = vld [vmem:[%s3402_s0 + $0x3f0] sm:$0xff] }
  0x91   : > { %1047 = vmatmul.f32.gmra.mxu1 %v2492_v48  ;;  %1111 = vmatmul.f32.gmra.mxu3 %v2221_v57  ;;  %v801_v10 = vld [vmem:[%s3402_s0 + $0xa68] sm:$0xff]  ;;  %v526_v46 = vld [vmem:[%s3402_s0 + $0x1d0] sm:$0xff] }
  0x92   : > { %1128 = vmatpush.msra.mxu0 %v617_v49  ;;  %1159 = vmatpush.msra.mxu1 %v685_v52  ;;  %v733_v13 = vld [vmem:[%s3402_s0 + $0x848] sm:$0xff]  ;;  %v650_v47 = vld [vmem:[%s3402_s0 + $0x5b0] sm:$0xff] }
  0x93   : > { %1224 = vmatpush.msra.mxu3 %v809_v53  ;;  %1193 = vmatpush.msra.mxu2 %v741_v54  ;;  %v673_v15 = vld [vmem:[%s3402_s0 + $0x668] sm:$0xff]  ;;  %v718_v49 = vld [vmem:[%s3402_s0 + $0x7d0] sm:$0xff] }
  0x94   : > { %1160 = vmatpush.msra.mxu1 %v681_v59  ;;  %1129 = vmatpush.msra.mxu0 %v613_v60  ;;  %v605_v16 = vld [vmem:[%s3402_s0 + $0x448] sm:$0xff]  ;;  %v522_v52 = vld [vmem:[%s3402_s0 + $0x1b0] sm:$0xff] }
  0x95   : > { %1194 = vmatpush.msra.mxu2 %v737_v62  ;;  %1225 = vmatpush.msra.mxu3 %v805_v2  ;;  %v729_v20 = vld [vmem:[%s3402_s0 + $0x828] sm:$0xff]  ;;  %v590_v53 = vld [vmem:[%s3402_s0 + $0x3d0] sm:$0xff] }
  0x96   : > { %1018 = vmatmul.f32.gmra.mxu0 %v2525_v4  ;;  %1082 = vmatmul.f32.gmra.mxu2 %v2263_v11  ;;  %v601_v25 = vld [vmem:[%s3402_s0 + $0x428] sm:$0xff]  ;;  %v714_v54 = vld [vmem:[%s3402_s0 + $0x7b0] sm:$0xff] }
  0x97   : > { %1130 = vmatpush.msra.mxu0 %v609_v8  ;;  %1161 = vmatpush.msra.mxu1 %v677_v9  ;;  %v669_v26 = vld [vmem:[%s3402_s0 + $0x648] sm:$0xff]  ;;  %v646_v59 = vld [vmem:[%s3402_s0 + $0x590] sm:$0xff] }
  0x98   : > { %1226 = vmatpush.msra.mxu3 %v801_v10  ;;  %1195 = vmatpush.msra.mxu2 %v733_v13  ;;  %v793_v28 = vld [vmem:[%s3402_s0 + $0xa28] sm:$0xff]  ;;  %v518_v60 = vld [vmem:[%s3402_s0 + $0x190] sm:$0xff] }
  0x99   : > { %1050 = vmatmul.f32.gmra.mxu1 %v2546_v14  ;;  %1114 = vmatmul.f32.gmra.mxu3 %v2291_v23  ;;  %v725_v29 = vld [vmem:[%s3402_s0 + $0x808] sm:$0xff]  ;;  %v642_v62 = vld [vmem:[%s3402_s0 + $0x570] sm:$0xff] }
  0x9a   : > { %1162 = vmatpush.msra.mxu1 %v673_v15  ;;  %1131 = vmatpush.msra.mxu0 %v605_v16  ;;  %v597_v30 = vld [vmem:[%s3402_s0 + $0x408] sm:$0xff]  ;;  %v710_v2 = vld [vmem:[%s3402_s0 + $0x790] sm:$0xff] }
  0x9b   : > { %1196 = vmatpush.msra.mxu2 %v729_v20  ;;  %1227 = vmatpush.msra.mxu3 %v797_v3  ;;  %v665_v31 = vld [vmem:[%s3402_s0 + $0x628] sm:$0xff]  ;;  %v514_v7 = vld [vmem:[%s3402_s0 + $0x170] sm:$0xff] }
  0x9c   : > { %1132 = vmatpush.msra.mxu0 %v601_v25  ;;  %1163 = vmatpush.msra.mxu1 %v669_v26  ;;  %v789_v32 = vld [vmem:[%s3402_s0 + $0xa08] sm:$0xff]  ;;  %v582_v8 = vld [vmem:[%s3402_s0 + $0x390] sm:$0xff] }
  0x9d   : > { %1228 = vmatpush.msra.mxu3 %v793_v28  ;;  %1197 = vmatpush.msra.mxu2 %v725_v29  ;;  %v661_v36 = vld [vmem:[%s3402_s0 + $0x608] sm:$0xff]  ;;  %v706_v9 = vld [vmem:[%s3402_s0 + $0x770] sm:$0xff] }
  0x9e   : > { %1133 = vmatpush.msra.mxu0 %v597_v30  ;;  %1164 = vmatpush.msra.mxu1 %v665_v31  ;;  %v638_v10 = vld [vmem:[%s3402_s0 + $0x550] sm:$0xff] }
  0x9f   : > { %1134 = vmatmul.f32.vlgmr.msra.gmra.mxu0 %v2033_v1  ;;  %1198 = vmatmul.f32.vlgmr.msra.gmra.mxu2 %v2331_v37  ;;  %v578_v13 = vld [vmem:[%s3402_s0 + $0x370] sm:$0xff] }
  0xa0   : > { %1229 = vmatpush.msra.mxu3 %v789_v32  ;;  %1310 = vmatpush.msrb.mxu2 %v658_v33  ;;  %v510_v15 = vld [vmem:[%s3402_s0 + $0x150] sm:$0xff] }
  0xa1   : > { %1165 = vmatpush.msra.mxu1 %v661_v36  ;;  %1230 = vmatmul.f32.vlgmr.msra.gmra.mxu3 %v2345_v43  ;;  %v634_v16 = vld [vmem:[%s3402_s0 + $0x530] sm:$0xff] }
  0xa2   : > { %1166 = vmatmul.f32.vlgmr.msra.gmra.mxu1 %v2050_v6  ;;  %1246 = vmatpush.msrb.mxu0 %v530_v38  ;;  %v702_v20 = vld [vmem:[%s3402_s0 + $0x750] sm:$0xff] }
  0xa3   : > { %1342 = vmatpush.msrb.mxu3 %v722_v41  ;;  %1311 = vmatpush.msrb.mxu2 %v654_v44  ;;  %v506_v3 = vld [vmem:[%s3402_s0 + $0x130] sm:$0xff] }
  0xa4   : > { %1278 = vmatpush.msrb.mxu1 %v594_v45  ;;  %1247 = vmatpush.msrb.mxu0 %v526_v46  ;;  %v574_v25 = vld [vmem:[%s3402_s0 + $0x350] sm:$0xff] }
  0xa5   : > { %1312 = vmatpush.msrb.mxu2 %v650_v47  ;;  %1343 = vmatpush.msrb.mxu3 %v718_v49  ;;  %v698_v26 = vld [vmem:[%s3402_s0 + $0x730] sm:$0xff] }
  0xa6   : > { %1248 = vmatpush.msrb.mxu0 %v522_v52  ;;  %1279 = vmatpush.msrb.mxu1 %v590_v53  ;;  %v630_v28 = vld [vmem:[%s3402_s0 + $0x510] sm:$0xff] }
  0xa7   : > { %1344 = vmatpush.msrb.mxu3 %v714_v54  ;;  %1137 = vmatmul.f32.gmra.mxu0 %v2088_v18  ;;  %v570_v29 = vld [vmem:[%s3402_s0 + $0x330] sm:$0xff] }
  0xa8   : > { %1201 = vmatmul.f32.gmra.mxu2 %v2380_v56  ;;  %1280 = vmatpush.msrb.mxu1 %v586_v55  ;;  %v502_v30 = vld [vmem:[%s3402_s0 + $0x110] sm:$0xff] }
  0xa9   : > { %1313 = vmatpush.msrb.mxu2 %v646_v59  ;;  %1233 = vmatmul.f32.gmra.mxu3 %v2390_v61  ;;  %v694_v31 = vld [vmem:[%s3402_s0 + $0x710] sm:$0xff] }
  0xaa   : > { %1169 = vmatmul.f32.gmra.mxu1 %v2101_v22  ;;  %1249 = vmatpush.msrb.mxu0 %v518_v60  ;;  %v498_v32 = vld [vmem:[%s3402_s0 + $0xf0] sm:$0xff] }
  0xab   : > { %1314 = vmatpush.msrb.mxu2 %v642_v62  ;;  %1345 = vmatpush.msrb.mxu3 %v710_v2  ;;  %v566_v33 = vld [vmem:[%s3402_s0 + $0x310] sm:$0xff] }
  0xac   : > { %1250 = vmatpush.msrb.mxu0 %v514_v7  ;;  %1281 = vmatpush.msrb.mxu1 %v582_v8  ;;  %v690_v36 = vld [vmem:[%s3402_s0 + $0x6f0] sm:$0xff] }
  0xad   : > { %1346 = vmatpush.msrb.mxu3 %v706_v9  ;;  %1315 = vmatpush.msrb.mxu2 %v638_v10  ;;  %v622_v38 = vld [vmem:[%s3402_s0 + $0x4d0] sm:$0xff] }
  0xae   : > { %1282 = vmatpush.msrb.mxu1 %v578_v13  ;;  %1251 = vmatpush.msrb.mxu0 %v510_v15  ;;  %v494_v41 = vld [vmem:[%s3402_s0 + $0xd0] sm:$0xff] }
  0xaf   : > { %1316 = vmatpush.msrb.mxu2 %v634_v16  ;;  %1347 = vmatpush.msrb.mxu3 %v702_v20  ;;  %v618_v44 = vld [vmem:[%s3402_s0 + $0x4b0] sm:$0xff] }
  0xb0   : > { %1140 = vmatmul.f32.gmra.mxu0 %v2144_v35  ;;  %1204 = vmatmul.f32.gmra.mxu2 %v2429_v19  ;;  %v626_v19 = vld [vmem:[%s3402_s0 + $0x4f0] sm:$0xff] }
  0xb1   : > { %1252 = vmatpush.msrb.mxu0 %v506_v3  ;;  %1283 = vmatpush.msrb.mxu1 %v574_v25  ;;  %v686_v45 = vld [vmem:[%s3402_s0 + $0x6d0] sm:$0xff] }
  0xb2   : > { %1348 = vmatpush.msrb.mxu3 %v698_v26  ;;  %1172 = vmatmul.f32.gmra.mxu1 %v2163_v40  ;;  %v490_v46 = vld [vmem:[%s3402_s0 + $0xb0] sm:$0xff]  ;;  %v531_v26 = vld [vmem:[%s3402_s0 + $0x1f8] sm:$0xff] }
  0xb3   : > { %1236 = vmatmul.f32.gmra.mxu3 %v2441_v27  ;;  %1317 = vmatpush.msrb.mxu2 %v630_v28  ;;  %v562_v27 = vld [vmem:[%s3402_s0 + $0x2f0] sm:$0xff] }
  0xb4   : > { %1284 = vmatpush.msrb.mxu1 %v570_v29  ;;  %1253 = vmatpush.msrb.mxu0 %v502_v30  ;;  %v558_v47 = vld [vmem:[%s3402_s0 + $0x2d0] sm:$0xff] }
  0xb5   : > { %1318 = vmatpush.msrb.mxu2 %v626_v19  ;;  %1349 = vmatpush.msrb.mxu3 %v694_v31  ;;  %v682_v49 = vld [vmem:[%s3402_s0 + $0x6b0] sm:$0xff]  ;;  %v595_v19 = vld [vmem:[%s3402_s0 + $0x3f8] sm:$0xff] }
  0xb6   : > { %1254 = vmatpush.msrb.mxu0 %v498_v32  ;;  %1285 = vmatpush.msrb.mxu1 %v566_v33  ;;  %v554_v52 = vld [vmem:[%s3402_s0 + $0x2b0] sm:$0xff]  ;;  %v527_v31 = vld [vmem:[%s3402_s0 + $0x1d8] sm:$0xff] }
  0xb7   : > { %1350 = vmatpush.msrb.mxu3 %v690_v36  ;;  %1319 = vmatpush.msrb.mxu2 %v622_v38  ;;  %v486_v53 = vld [vmem:[%s3402_s0 + $0x90] sm:$0xff]  ;;  %v523_v33 = vld [vmem:[%s3402_s0 + $0x1b8] sm:$0xff] }
  0xb8   : > { %1143 = vmatmul.f32.gmra.mxu0 %v2199_v51  ;;  %1207 = vmatmul.f32.gmra.mxu2 %v2475_v42  ;;  %v614_v42 = vld [vmem:[%s3402_s0 + $0x490] sm:$0xff]  ;;  %v591_v36 = vld [vmem:[%s3402_s0 + $0x3d8] sm:$0xff] }
  0xb9   : > { %1286 = vmatpush.msrb.mxu1 %v562_v27  ;;  %1255 = vmatpush.msrb.mxu0 %v494_v41  ;;  %v610_v54 = vld [vmem:[%s3402_s0 + $0x470] sm:$0xff] }
  0xba   : > { %1320 = vmatpush.msrb.mxu2 %v618_v44  ;;  %1351 = vmatpush.msrb.mxu3 %v686_v45  ;;  %v678_v55 = vld [vmem:[%s3402_s0 + $0x690] sm:$0xff]  ;;  %v519_v44 = vld [vmem:[%s3402_s0 + $0x198] sm:$0xff] }
  0xbb   : > { %1175 = vmatmul.f32.gmra.mxu1 %v2224_v58  ;;  %1239 = vmatmul.f32.gmra.mxu3 %v2492_v48  ;;  %v482_v48 = vld [vmem:[%s3402_s0 + $0x70] sm:$0xff] }
  0xbc   : > { %1256 = vmatpush.msrb.mxu0 %v490_v46  ;;  %1287 = vmatpush.msrb.mxu1 %v558_v47  ;;  %v550_v59 = vld [vmem:[%s3402_s0 + $0x290] sm:$0xff] }
  0xbd   : > { %1352 = vmatpush.msrb.mxu3 %v682_v49  ;;  %1321 = vmatpush.msrb.mxu2 %v614_v42  ;;  %v674_v60 = vld [vmem:[%s3402_s0 + $0x670] sm:$0xff]  ;;  %v515_v49 = vld [vmem:[%s3402_s0 + $0x178] sm:$0xff] }
  0xbe   : > { %1288 = vmatpush.msrb.mxu1 %v554_v52  ;;  %1257 = vmatpush.msrb.mxu0 %v486_v53  ;;  %v606_v62 = vld [vmem:[%s3402_s0 + $0x450] sm:$0xff]  ;;  %v583_v42 = vld [vmem:[%s3402_s0 + $0x398] sm:$0xff] }
  0xbf   : > { %1322 = vmatpush.msrb.mxu2 %v610_v54  ;;  %1353 = vmatpush.msrb.mxu3 %v678_v55  ;;  %v546_v2 = vld [vmem:[%s3402_s0 + $0x270] sm:$0xff]  ;;  %v579_v53 = vld [vmem:[%s3402_s0 + $0x378] sm:$0xff] }
  0xc0   : > { %1146 = vmatmul.f32.gmra.mxu0 %v2268_v12  ;;  %1210 = vmatmul.f32.gmra.mxu2 %v2525_v4  ;;  %v478_v7 = vld [vmem:[%s3402_s0 + $0x50] sm:$0xff]  ;;  %v511_v54 = vld [vmem:[%s3402_s0 + $0x158] sm:$0xff] }
  0xc1   : > { %1258 = vmatpush.msrb.mxu0 %v482_v48  ;;  %1289 = vmatpush.msrb.mxu1 %v550_v59  ;;  %v602_v8 = vld [vmem:[%s3402_s0 + $0x430] sm:$0xff]  ;;  %v575_v48 = vld [vmem:[%s3402_s0 + $0x358] sm:$0xff] }
  0xc2   : > { %1354 = vmatpush.msrb.mxu3 %v674_v60  ;;  %1323 = vmatpush.msrb.mxu2 %v606_v62  ;;  %v670_v9 = vld [vmem:[%s3402_s0 + $0x650] sm:$0xff] }
  0xc3   : > { %1178 = vmatmul.f32.gmra.mxu1 %v2296_v24  ;;  %1242 = vmatmul.f32.gmra.mxu3 %v2546_v14  ;;  %v474_v10 = vld [vmem:[%s3402_s0 + $0x30] sm:$0xff] }
  0xc4   : > { %v542_v13 = vld [vmem:[%s3402_s0 + $0x250] sm:$0xff]  ;;  %1290 = vmatpush.msrb.mxu1 %v546_v2  ;;  %1259 = vmatpush.msrb.mxu0 %v478_v7  ;;  %v571_v2 = vld [vmem:[%s3402_s0 + $0x338] sm:$0xff] }
  0xc5   : > { %v666_v15 = vld [vmem:[%s3402_s0 + $0x630] sm:$0xff]  ;;  %1324 = vmatpush.msrb.mxu2 %v602_v8  ;;  %1355 = vmatpush.msrb.mxu3 %v670_v9  ;;  %v503_v9 = vld [vmem:[%s3402_s0 + $0x118] sm:$0xff] }
  0xc6   : > { %v598_v16 = vld [vmem:[%s3402_s0 + $0x410] sm:$0xff]  ;;  %1260 = vmatpush.msrb.mxu0 %v474_v10  ;;  %1291 = vmatpush.msrb.mxu1 %v542_v13 }
  0xc7   : > { %v470_v20 = vld [vmem:[%s3402_s0 + $0x10] sm:$0xff]  ;;  %1356 = vmatpush.msrb.mxu3 %v666_v15  ;;  %1325 = vmatpush.msrb.mxu2 %v598_v16 }
  0xc8   : > { %v538_v3 = vld [vmem:[%s3402_s0 + $0x230] sm:$0xff]  ;;  %1261 = vmatpush.msrb.mxu0 %v470_v20  ;;  %v2801_v29 = vpop.f32.mrf.mxu0  ;;  %1326 = vmatmul.f32.vlgmr.msrb.gmra.mxu2 %v2033_v1 }
  0xc9   : > { %v662_v25 = vld [vmem:[%s3402_s0 + $0x610] sm:$0xff]  ;;  %1292 = vmatpush.msrb.mxu1 %v538_v3  ;;  %1262 = vmatmul.f32.vlgmr.msrb.gmra.mxu0 %v2030_v63  ;;  %v495_v3 = vld [vmem:[%s3402_s0 + $0xd8] sm:$0xff] }
  0xca   : > { %v534_v28 = vld [vmem:[%s3402_s0 + $0x210] sm:$0xff]  ;;  %1357 = vmatpush.msrb.mxu3 %v662_v25  ;;  %1438 = vmatpush.msra.mxu2 %v531_v26  ;;  %v2814_v32 = vpop.f32.mrf.mxu1 }
  0xcb   : > { %v786_v30 = vld [vmem:[%s3402_s0 + $0x9f0] sm:$0xff]  ;;  %1293 = vmatpush.msrb.mxu1 %v534_v28  ;;  %1358 = vmatmul.f32.vlgmr.msrb.gmra.mxu3 %v2050_v6 }
  0xcc   : > { %v850_v63 = vld [vmem:[%s3402_s0 + $0xbf0] sm:$0xff]  ;;  %1294 = vmatmul.f32.vlgmr.msrb.gmra.mxu1 %v2045_v5  ;;  %1374 = vmatpush.msra.mxu0 %v786_v30  ;;  %v587_v5 = vld [vmem:[%s3402_s0 + $0x3b8] sm:$0xff] }
  0xcd   : > { %v782_v1 = vld [vmem:[%s3402_s0 + $0x9d0] sm:$0xff]  ;;  %1470 = vmatpush.msra.mxu3 %v595_v19  ;;  %1439 = vmatpush.msra.mxu2 %v527_v31  ;;  %v491_v19 = vld [vmem:[%s3402_s0 + $0xb8] sm:$0xff] }
  0xce   : > { %v778_v6 = vld [vmem:[%s3402_s0 + $0x9b0] sm:$0xff]  ;;  %1406 = vmatpush.msra.mxu1 %v850_v63  ;;  %1375 = vmatpush.msra.mxu0 %v782_v1  ;;  %v2839_v27 = vpop.f32.mrf.mxu2  ;;  %v559_v31 = vld [vmem:[%s3402_s0 + $0x2d8] sm:$0xff] }
  0xcf   : > { %v846_v38 = vld [vmem:[%s3402_s0 + $0xbd0] sm:$0xff]  ;;  %1440 = vmatpush.msra.mxu2 %v523_v33  ;;  %1471 = vmatpush.msra.mxu3 %v591_v36 }
  0xd0   : > { %v842_v41 = vld [vmem:[%s3402_s0 + $0xbb0] sm:$0xff]  ;;  %1376 = vmatpush.msra.mxu0 %v778_v6  ;;  %1407 = vmatpush.msra.mxu1 %v846_v38  ;;  %v2847_v45 = vpop.f32.mrf.mxu0 }
  0xd1   : > { %1472 = vmatpush.msra.mxu3 %v587_v5  ;;  %1265 = vmatmul.f32.gmra.mxu0 %v2085_v17  ;;  %v774_v46 = vld [vmem:[%s3402_s0 + $0x990] sm:$0xff]  ;;  %v2853_v47 = vpop.f32.mrf.mxu3 }
  0xd2   : > { %1329 = vmatmul.f32.gmra.mxu2 %v2088_v18  ;;  %1408 = vmatpush.msra.mxu1 %v842_v41  ;;  %v2862_v52 = vpop.f32.mrf.mxu1  ;;  %v770_v17 = vld [vmem:[%s3402_s0 + $0x970] sm:$0xff] }
  0xd3   : > { %1441 = vmatpush.msra.mxu2 %v519_v44  ;;  %1361 = vmatmul.f32.gmra.mxu3 %v2101_v22  ;;  %v838_v18 = vld [vmem:[%s3402_s0 + $0xb90] sm:$0xff]  ;;  %v483_v44 = vld [vmem:[%s3402_s0 + $0x78] sm:$0xff] }
  0xd4   : > { %1297 = vmatmul.f32.gmra.mxu1 %v2097_v21  ;;  %1377 = vmatpush.msra.mxu0 %v774_v46  ;;  %v834_v22 = vld [vmem:[%s3402_s0 + $0xb70] sm:$0xff]  ;;  %v507_v21 = vld [vmem:[%s3402_s0 + $0x138] sm:$0xff] }
  0xd5   : > { %1442 = vmatpush.msra.mxu2 %v515_v49  ;;  %1473 = vmatpush.msra.mxu3 %v583_v42  ;;  %v766_v55 = vld [vmem:[%s3402_s0 + $0x950] sm:$0xff]  ;;  %v547_v42 = vld [vmem:[%s3402_s0 + $0x278] sm:$0xff] }
  0xd6   : > { %1378 = vmatpush.msra.mxu0 %v770_v17  ;;  %1409 = vmatpush.msra.mxu1 %v838_v18  ;;  %v762_v60 = vld [vmem:[%s3402_s0 + $0x930] sm:$0xff]  ;;  %v479_v17 = vld [vmem:[%s3402_s0 + $0x58] sm:$0xff] }
  0xd7   : > { %1474 = vmatpush.msra.mxu3 %v579_v53  ;;  %1443 = vmatpush.msra.mxu2 %v511_v54  ;;  %v2890_v59 = vpop.f32.mrf.mxu2  ;;  %v830_v62 = vld [vmem:[%s3402_s0 + $0xb50] sm:$0xff] }
  0xd8   : > { %1410 = vmatpush.msra.mxu1 %v834_v22  ;;  %1379 = vmatpush.msra.mxu0 %v766_v55  ;;  %v826_v10 = vld [vmem:[%s3402_s0 + $0xb30] sm:$0xff]  ;;  %v475_v22 = vld [vmem:[%s3402_s0 + $0x38] sm:$0xff] }
  0xd9   : > { %1444 = vmatpush.msra.mxu2 %v507_v21  ;;  %1475 = vmatpush.msra.mxu3 %v575_v48  ;;  %v2901_v7 = vpop.f32.mrf.mxu0  ;;  %v2903_v8 = vpop.f32.mrf.mxu3  ;;  %v758_v13 = vld [vmem:[%s3402_s0 + $0x910] sm:$0xff]  ;;  %v543_v55 = vld [vmem:[%s3402_s0 + $0x258] sm:$0xff] }
  0xda   : > { %1268 = vmatmul.f32.gmra.mxu0 %v2141_v34  ;;  %1332 = vmatmul.f32.gmra.mxu2 %v2144_v35  ;;  %v499_v34 = vld [vmem:[%s3402_s0 + $0xf8] sm:$0xff]  ;;  %v754_v16 = vld [vmem:[%s3402_s0 + $0x8f0] sm:$0xff] }
  0xdb   : > { %1380 = vmatpush.msra.mxu0 %v762_v60  ;;  %1411 = vmatpush.msra.mxu1 %v830_v62  ;;  %v2916_v15 = vpop.f32.mrf.mxu1  ;;  %v567_v35 = vld [vmem:[%s3402_s0 + $0x318] sm:$0xff]  ;;  %v822_v20 = vld [vmem:[%s3402_s0 + $0xb10] sm:$0xff] }
  0xdc   : > { %1476 = vmatpush.msra.mxu3 %v571_v2  ;;  %1300 = vmatmul.f32.gmra.mxu1 %v2156_v39  ;;  %v2935_v39 = vld [vmem:[%s3403_s1] sm:$0xf]  ;;  %v818_v26 = vld [vmem:[%s3402_s0 + $0xaf0] sm:$0xff] }
  0xdd   : > { %1364 = vmatmul.f32.gmra.mxu3 %v2163_v40  ;;  %1445 = vmatpush.msra.mxu2 %v503_v9  ;;  %v563_v40 = vld [vmem:[%s3402_s0 + $0x2f8] sm:$0xff]  ;;  %v750_v28 = vld [vmem:[%s3402_s0 + $0x8d0] sm:$0xff]  ;;  %v2952_v30 = vperm.slane %v2935_v39, 0 }
  0xde   : > { %1412 = vmatpush.msra.mxu1 %v826_v10  ;;  %1381 = vmatpush.msra.mxu0 %v758_v13  ;;  %v746_v33 = vld [vmem:[%s3402_s0 + $0x8b0] sm:$0xff] }
  0xdf   : > { %1446 = vmatpush.msra.mxu2 %v499_v34  ;;  %1477 = vmatpush.msra.mxu3 %v567_v35  ;;  %v2943_v25 = vpop.f32.mrf.mxu2  ;;  %v814_v36 = vld [vmem:[%s3402_s0 + $0xad0] sm:$0xff]  ;;  %v880_v38 = vadd.f32 %v2801_v29, %v2952_v30  ;;  %v883_v60 = vadd.f32 %v2847_v45, %v2952_v30  ;;  %v471_v45 = vld [vmem:[%s3402_s0 + $0x18] sm:$0xff] }
  0xe0   : > { %1382 = vmatpush.msra.mxu0 %v754_v16  ;;  %1413 = vmatpush.msra.mxu1 %v822_v20  ;;  %v810_v5 = vld [vmem:[%s3402_s0 + $0xab0] sm:$0xff]  ;;  %v535_v16 = vld [vmem:[%s3402_s0 + $0x218] sm:$0xff] }
  0xe1   : > { %1478 = vmatpush.msra.mxu3 %v563_v40  ;;  %1447 = vmatpush.msra.mxu2 %v495_v3  ;;  %v2960_v63 = vpop.f32.mrf.mxu0  ;;  %v742_v41 = vld [vmem:[%s3402_s0 + $0x890] sm:$0xff]  ;;  %v912_v49 = vadd.f32 %v2814_v32, %v880_v38  ;;  %v915_v35 = vadd.f32 %v2862_v52, %v883_v60  ;;  %v787_v20 = vld [vmem:[%s3402_s0 + $0x9f8] sm:$0xff]  ;;  %v1757_v3 = vld [vmem:[%s2015_s12] sm:$0xff] }
  0xe2   : > { %1271 = vmatmul.f32.gmra.mxu0 %v2196_v50  ;;  %1335 = vmatmul.f32.gmra.mxu2 %v2199_v51  ;;  %v2964_v1 = vpop.f32.mrf.mxu3  ;;  %v555_v50 = vld [vmem:[%s3402_s0 + $0x2b8] sm:$0xff]  ;;  %v738_v29 = vld [vmem:[%s3402_s0 + $0x870] sm:$0xff] }
  0xe3   : > { %1414 = vmatpush.msra.mxu1 %v818_v26  ;;  %1383 = vmatpush.msra.mxu0 %v750_v28  ;;  %v487_v51 = vld [vmem:[%s3402_s0 + $0x98] sm:$0xff]  ;;  %v806_v46 = vld [vmem:[%s3402_s0 + $0xa90] sm:$0xff]  ;;  %v944_v48 = vadd.f32 %v2839_v27, %v912_v49 }
  0xe4   : > { %1448 = vmatpush.msra.mxu2 %v491_v19  ;;  %1479 = vmatpush.msra.mxu3 %v559_v31  ;;  %v2978_v6 = vpop.f32.mrf.mxu1  ;;  %v802_v32 = vld [vmem:[%s3402_s0 + $0xa70] sm:$0xff]  ;;  %v539_v27 = vld [vmem:[%s3402_s0 + $0x238] sm:$0xff] }
  0xe5   : > { %1303 = vmatmul.f32.gmra.mxu1 %v2221_v57  ;;  %1367 = vmatmul.f32.gmra.mxu3 %v2224_v58  ;;  %v551_v57 = vld [vmem:[%s3402_s0 + $0x298] sm:$0xff]  ;;  %v734_v54 = vld [vmem:[%s3402_s0 + $0x850] sm:$0xff]  ;;  %v976_v34 = vadd.f32 %v2853_v47, %v944_v48 }
  0xe6   : > { %1384 = vmatpush.msra.mxu0 %v746_v33  ;;  %1415 = vmatpush.msra.mxu1 %v814_v36  ;;  %v730_v62 = vld [vmem:[%s3402_s0 + $0x830] sm:$0xff]  ;;  %v659_v26 = vld [vmem:[%s3402_s0 + $0x5f8] sm:$0xff]  ;;  %v947_v33 = vadd.f32 %v2890_v59, %v915_v35  ;;  %v886_v59 = vadd.f32 %v2901_v7, %v2952_v30 }
  0xe7   : > { %1480 = vmatpush.msra.mxu3 %v555_v50  ;;  %1449 = vmatpush.msra.mxu2 %v487_v51  ;;  %v2996_v58 = vpop.f32.mrf.mxu2  ;;  %v798_v2 = vld [vmem:[%s3402_s0 + $0xa50] sm:$0xff]  ;;  %v851_v19 = vld [vmem:[%s3402_s0 + $0xbf8] sm:$0xff] }
  0xe8   : > { %1416 = vmatpush.msra.mxu1 %v810_v5  ;;  %1385 = vmatpush.msra.mxu0 %v742_v41  ;;  %v726_v9 = vld [vmem:[%s3402_s0 + $0x810] sm:$0xff]  ;;  %v783_v31 = vld [vmem:[%s3402_s0 + $0x9d8] sm:$0xff]  ;;  %v918_v49 = vadd.f32 %v2916_v15, %v886_v59  ;;  %v3205_v59 = vld [vmem:[%s2015_s12 + $0x88] sm:$0xff] }
  0xe9   : > { %1450 = vmatpush.msra.mxu2 %v483_v44  ;;  %1481 = vmatpush.msra.mxu3 %v551_v57  ;;  %v3011_v18 = vpop.f32.mrf.mxu0  ;;  %v794_v10 = vld [vmem:[%s3402_s0 + $0xa30] sm:$0xff]  ;;  %v723_v36 = vld [vmem:[%s3402_s0 + $0x7f8] sm:$0xff] }
  0xea   : > { %1274 = vmatmul.f32.gmra.mxu0 %v2263_v11  ;;  %1338 = vmatmul.f32.gmra.mxu2 %v2268_v12  ;;  %v3015_v53 = vpop.f32.mrf.mxu3  ;;  %v790_v40 = vld [vmem:[%s3402_s0 + $0xa10] sm:$0xff]  ;;  %v655_v50 = vld [vmem:[%s3402_s0 + $0x5d8] sm:$0xff] }
  0xeb   : > { %1386 = vmatpush.msra.mxu0 %v738_v29  ;;  %1417 = vmatpush.msra.mxu1 %v806_v46  ;;  %v779_v38 = vld [vmem:[%s3402_s0 + $0x9b8] sm:$0xff]  ;;  %v979_v29 = vadd.f32 %v2903_v8, %v947_v33 }
  0xec   : > { %1482 = vmatpush.msra.mxu3 %v547_v42  ;;  %1451 = vmatpush.msra.mxu2 %v479_v17  ;;  %v3030_v21 = vpop.f32.mrf.mxu1  ;;  %v847_v5 = vld [vmem:[%s3402_s0 + $0xbd8] sm:$0xff] }
  0xed   : > { %1306 = vmatmul.f32.gmra.mxu1 %v2291_v23  ;;  %1370 = vmatmul.f32.gmra.mxu3 %v2296_v24  ;;  %v651_v44 = vld [vmem:[%s3402_s0 + $0x5b8] sm:$0xff] }
  0xee   : > { %1418 = vmatpush.msra.mxu1 %v802_v32  ;;  %1387 = vmatpush.msra.mxu0 %v734_v54  ;;  %v843_v7 = vld [vmem:[%s3402_s0 + $0xbb8] sm:$0xff] }
  0xef   : > { %1452 = vmatpush.msra.mxu2 %v475_v22  ;;  %1483 = vmatpush.msra.mxu3 %v543_v55  ;;  %v3060_v13 = vpop.f32.mrf.mxu2  ;;  %v715_v46 = vld [vmem:[%s3402_s0 + $0x7b8] sm:$0xff]  ;;  %v1759_v22 = vld [vmem:[%s2015_s12 + $0x30] sm:$0xff] }
  0xf0   : > { %1388 = vmatpush.msra.mxu0 %v730_v62  ;;  %1419 = vmatpush.msra.mxu1 %v798_v2  ;;  %v775_v42 = vld [vmem:[%s3402_s0 + $0x998] sm:$0xff]  ;;  %v950_v2 = vadd.f32 %v2943_v25, %v918_v49 }
  0xf1   : > { %1484 = vmatpush.msra.mxu3 %v539_v27  ;;  %1453 = vmatpush.msra.mxu2 %v471_v45  ;;  %v647_v8 = vld [vmem:[%s3402_s0 + $0x598] sm:$0xff]  ;;  %v889_v27 = vadd.f32 %v2960_v63, %v2952_v30 }
  0xf2   : > { %1389 = vmatpush.msra.mxu0 %v726_v9  ;;  %1420 = vmatpush.msra.mxu1 %v794_v10  ;;  %v3073_v47 = vpop.f32.mrf.mxu3  ;;  %v1007_v52 = vpop.f32.mrf.mxu0  ;;  %v771_v15 = vld [vmem:[%s3402_s0 + $0x978] sm:$0xff] }
  0xf3   : > { %1390 = vmatmul.f32.vlgmr.msra.gmra.mxu0 %v2331_v37  ;;  %1454 = vmatmul.f32.vlgmr.msra.gmra.mxu2 %v1757_v3  ;;  %v1008_v28 = vadd.f32 %v1007_v52, %v976_v34  ;;  %v1758_v37 = vld [vmem:[%s2015_s12 + $0x8] sm:$0xff]  ;;  %v839_v55 = vld [vmem:[%s3402_s0 + $0xb98] sm:$0xff] }
  0xf4   : > { %1485 = vmatpush.msra.mxu3 %v535_v16  ;;  %1566 = vmatpush.msrb.mxu2 %v787_v20  ;;  %v1760_v48 = vld [vmem:[%s2015_s12 + $0x38] sm:$0xff]  ;;  %v982_v16 = vadd.f32 %v2964_v1, %v950_v2  ;;  %v921_v20 = vadd.f32 %v2978_v6, %v889_v27 }
  0xf5   : > { %1421 = vmatpush.msra.mxu1 %v790_v40  ;;  %1486 = vmatmul.f32.vlgmr.msra.gmra.mxu3 %v1758_v37  ;;  %v1039_v51 = vpop.f32.mrf.mxu1  ;;  %v711_v60 = vld [vmem:[%s3402_s0 + $0x798] sm:$0xff] }
  0xf6   : > { %1422 = vmatmul.f32.vlgmr.msra.gmra.mxu1 %v2345_v43  ;;  %1502 = vmatpush.msrb.mxu0 %v659_v26  ;;  %v1040_v41 = vadd.f32 %v1039_v51, %v1008_v28  ;;  %v719_v43 = vld [vmem:[%s3402_s0 + $0x7d8] sm:$0xff]  ;;  %v3188_v26 = vld [vmem:[%s2015_s12 + $0x80] sm:$0xff]  ;;  %v892_v51 = vadd.f32 %v3011_v18, %v2952_v30 }
  0xf7   : > { %1598 = vmatpush.msrb.mxu3 %v851_v19  ;;  %1567 = vmatpush.msrb.mxu2 %v783_v31  ;;  %v835_v45 = vld [vmem:[%s3402_s0 + $0xb78] sm:$0xff]  ;;  %v1762_v28 = vld [vmem:[%s2015_s12 + $0x60] sm:$0xff] }
  0xf8   : > { %1534 = vmatpush.msrb.mxu1 %v723_v36  ;;  %1503 = vmatpush.msrb.mxu0 %v655_v50  ;;  %1630 = vst [vmem:[%s3098_s10] sm:$0xff] %v1040_v41  ;;  %v3119_v57 = vpop.f32.mrf.mxu2  ;;  %v767_v9 = vld [vmem:[%s3402_s0 + $0x958] sm:$0xff]  ;;  %v953_v50 = vadd.f32 %v2996_v58, %v921_v20 }
  0xf9   : > { %1568 = vmatpush.msrb.mxu2 %v779_v38  ;;  %1599 = vmatpush.msrb.mxu3 %v847_v5  ;;  %v707_v25 = vld [vmem:[%s3402_s0 + $0x778] sm:$0xff] }
  0xfa   : > { %1504 = vmatpush.msrb.mxu0 %v651_v44  ;;  %1535 = vmatpush.msrb.mxu1 %v719_v43  ;;  %v1010_v17 = vpop.f32.mrf.mxu0  ;;  %v3129_v32 = vpop.f32.mrf.mxu3  ;;  %v763_v63 = vld [vmem:[%s3402_s0 + $0x938] sm:$0xff]  ;;  %v1764_v44 = vld [vmem:[%s2015_s12 + $0x68] sm:$0xff] }
  0xfb   : > { %1600 = vmatpush.msrb.mxu3 %v843_v7  ;;  %1393 = vmatmul.f32.gmra.mxu0 %v2380_v56  ;;  %v1011_v54 = vadd.f32 %v1010_v17, %v979_v29  ;;  %v643_v56 = vld [vmem:[%s3402_s0 + $0x578] sm:$0xff]  ;;  %v985_v29 = vadd.f32 %v3015_v53, %v953_v50 }
  0xfc   : > { %1457 = vmatmul.f32.gmra.mxu2 %v1759_v22  ;;  %1536 = vmatpush.msrb.mxu1 %v715_v46  ;;  %v831_v34 = vld [vmem:[%s3402_s0 + $0xb58] sm:$0xff]  ;;  %v924_v46 = vadd.f32 %v3030_v21, %v892_v51 }
  0xfd   : > { %1569 = vmatpush.msrb.mxu2 %v775_v42  ;;  %1489 = vmatmul.f32.gmra.mxu3 %v1760_v48  ;;  %v1042_v62 = vpop.f32.mrf.mxu1  ;;  %v635_v40 = vld [vmem:[%s3402_s0 + $0x538] sm:$0xff] }
  0xfe   : > { %1425 = vmatmul.f32.gmra.mxu1 %v2390_v61  ;;  %1505 = vmatpush.msrb.mxu0 %v647_v8  ;;  %v1043_v10 = vadd.f32 %v1042_v62, %v1011_v54  ;;  %v639_v61 = vld [vmem:[%s3402_s0 + $0x558] sm:$0xff]  ;;  %v3245_v8 = vld [vmem:[%s2015_s12 + $0xb0] sm:$0xff] }
  0xff   : > { %1570 = vmatpush.msrb.mxu2 %v771_v15  ;;  %1601 = vmatpush.msrb.mxu3 %v839_v55  ;;  %v703_v52 = vld [vmem:[%s3402_s0 + $0x758] sm:$0xff]  ;;  %v1766_v54 = vld [vmem:[%s2015_s12 + $0x90] sm:$0xff] }
 0x100   : > { %1506 = vmatpush.msrb.mxu0 %v643_v56  ;;  %1537 = vmatpush.msrb.mxu1 %v711_v60  ;;  %1634 = vst [vmem:[%s3098_s10 + $0x20] sm:$0xff] %v1043_v10  ;;  %v827_v1 = vld [vmem:[%s3402_s0 + $0xb38] sm:$0xff]  ;;  %v956_v56 = vadd.f32 %v3060_v13, %v924_v46  ;;  %v1769_v46 = vld [vmem:[%s2015_s12 + $0x10] sm:$0xff] }
 0x101   : > { %1602 = vmatpush.msrb.mxu3 %v835_v45  ;;  %1571 = vmatpush.msrb.mxu2 %v767_v9  ;;  %v3172_v35 = vpop.f32.mrf.mxu2  ;;  %v759_v19 = vld [vmem:[%s3402_s0 + $0x918] sm:$0xff] }
 0x102   : > { %1538 = vmatpush.msrb.mxu1 %v707_v25  ;;  %1507 = vmatpush.msrb.mxu0 %v639_v61  ;;  %v3182_v3 = vpop.f32.mrf.mxu3  ;;  %v699_v33 = vld [vmem:[%s3402_s0 + $0x738] sm:$0xff] }
 0x103   : > { %1572 = vmatpush.msrb.mxu2 %v763_v63  ;;  %1603 = vmatpush.msrb.mxu3 %v831_v34  ;;  %v1013_v6 = vpop.f32.mrf.mxu0  ;;  %v631_v37 = vld [vmem:[%s3402_s0 + $0x518] sm:$0xff]  ;;  %v988_v34 = vadd.f32 %v3073_v47, %v956_v56 }
 0x104   : > { %1396 = vmatmul.f32.gmra.mxu0 %v3188_v26  ;;  %1460 = vmatmul.f32.gmra.mxu2 %v1762_v28  ;;  %v1014_v31 = vadd.f32 %v1013_v6, %v982_v16  ;;  %v755_v38 = vld [vmem:[%s3402_s0 + $0x8f8] sm:$0xff] }
 0x105   : > { %1508 = vmatpush.msrb.mxu0 %v635_v40  ;;  %1539 = vmatpush.msrb.mxu1 %v703_v52  ;;  %v1045_v36 = vpop.f32.mrf.mxu1  ;;  %v823_v5 = vld [vmem:[%s3402_s0 + $0xb18] sm:$0xff]  ;;  %v3292_v40 = vperm.slane %v2935_v39, 1 }
 0x106   : > { %1604 = vmatpush.msrb.mxu3 %v827_v1  ;;  %1428 = vmatmul.f32.gmra.mxu1 %v3205_v59  ;;  %v1046_v41 = vadd.f32 %v1045_v36, %v1014_v31  ;;  %v627_v30 = vld [vmem:[%s3402_s0 + $0x4f8] sm:$0xff] }
 0x107   : > { %1492 = vmatmul.f32.gmra.mxu3 %v1764_v44  ;;  %1573 = vmatpush.msrb.mxu2 %v759_v19  ;;  %v695_v58 = vld [vmem:[%s3402_s0 + $0x718] sm:$0xff]  ;;  %v1072_v36 = vadd.f32 %v3119_v57, %v3292_v40 }
 0x108   : > { %1540 = vmatpush.msrb.mxu1 %v699_v33  ;;  %1509 = vmatpush.msrb.mxu0 %v631_v37  ;;  %v819_v18 = vld [vmem:[%s3402_s0 + $0xaf8] sm:$0xff]  ;;  %1638 = vst [vmem:[%s3098_s10 + $0x40] sm:$0xff] %v1046_v41 }
 0x109   : > { %v751_v43 = vld [vmem:[%s3402_s0 + $0x8d8] sm:$0xff]  ;;  %1574 = vmatpush.msrb.mxu2 %v755_v38  ;;  %1605 = vmatpush.msrb.mxu3 %v823_v5  ;;  %v3228_v7 = vpop.f32.mrf.mxu2 }
 0x10a   : > { %1510 = vmatpush.msrb.mxu0 %v627_v30  ;;  %1541 = vmatpush.msrb.mxu1 %v695_v58  ;;  %v691_v49 = vld [vmem:[%s3402_s0 + $0x6f8] sm:$0xff]  ;;  %v1104_v30 = vadd.f32 %v3129_v32, %v1072_v36  ;;  %v1770_v32 = vld [vmem:[%s2015_s12 + $0x20] sm:$0xff] }
 0x10b   : > { %v623_v42 = vld [vmem:[%s3402_s0 + $0x4d8] sm:$0xff]  ;;  %1606 = vmatpush.msrb.mxu3 %v819_v18  ;;  %1575 = vmatpush.msrb.mxu2 %v751_v43  ;;  %v1016_v21 = vpop.f32.mrf.mxu0 }
 0x10c   : > { %v747_v17 = vld [vmem:[%s3402_s0 + $0x8b8] sm:$0xff]  ;;  %1399 = vmatmul.f32.gmra.mxu0 %v3245_v8  ;;  %1463 = vmatmul.f32.gmra.mxu2 %v1766_v54  ;;  %v1017_v22 = vadd.f32 %v1016_v21, %v985_v29  ;;  %v3249_v15 = vpop.f32.mrf.mxu3  ;;  %v1075_v21 = vadd.f32 %v3172_v35, %v3292_v40 }
 0x10d   : > { %v815_v53 = vld [vmem:[%s3402_s0 + $0xad8] sm:$0xff]  ;;  %1542 = vmatpush.msrb.mxu1 %v691_v49  ;;  %1511 = vmatpush.msrb.mxu0 %v623_v42 }
 0x10e   : > { %v619_v55 = vld [vmem:[%s3402_s0 + $0x4b8] sm:$0xff]  ;;  %1576 = vmatpush.msrb.mxu2 %v747_v17  ;;  %1607 = vmatpush.msrb.mxu3 %v815_v53  ;;  %v1048_v2 = vpop.f32.mrf.mxu1  ;;  %v1772_v17 = vld [vmem:[%s2015_s12 + $0x28] sm:$0xff] }
 0x10f   : > { %v687_v48 = vld [vmem:[%s3402_s0 + $0x6d8] sm:$0xff]  ;;  %v1049_v10 = vadd.f32 %v1048_v2, %v1017_v22  ;;  %1512 = vmatpush.msrb.mxu0 %v619_v55  ;;  %v1774_v2 = vld [vmem:[%s2015_s12 + $0x50] sm:$0xff] }
 0x110   : > { %v811_v60 = vld [vmem:[%s3402_s0 + $0xab8] sm:$0xff]  ;;  %1543 = vmatpush.msrb.mxu1 %v687_v48  ;;  %v1107_v48 = vadd.f32 %v3182_v3, %v1075_v21 }
 0x111   : > { %v743_v62 = vld [vmem:[%s3402_s0 + $0x898] sm:$0xff]  ;;  %1608 = vmatpush.msrb.mxu3 %v811_v60  ;;  %1642 = vst [vmem:[%s3098_s10 + $0x60] sm:$0xff] %v1049_v10  ;;  %v3282_v63 = vpop.f32.mrf.mxu2 }
 0x112   : > { %v3265_v27 = vld [vmem:[%s2015_s12 + $0xb8] sm:$0xff]  ;;  %1577 = vmatpush.msrb.mxu2 %v743_v62  ;;  %v1773_v62 = vld [vmem:[%s2015_s12 + $0x40] sm:$0xff] }
 0x113   : > { %1431 = vmatmul.f32.gmra.mxu1 %v3265_v27  ;;  %v1768_v45 = vld [vmem:[%s2015_s12 + $0x98] sm:$0xff]  ;;  %v1019_v1 = vpop.f32.mrf.mxu0 }
 0x114   : > { %1495 = vmatmul.f32.gmra.mxu3 %v1768_v45  ;;  %v683_v13 = vld [vmem:[%s3402_s0 + $0x6b8] sm:$0xff]  ;;  %1402 = vmatmul.f32.gmra.mxu0 %v2525_v4  ;;  %v1020_v6 = vadd.f32 %v1019_v1, %v988_v34  ;;  %v3302_v28 = vpop.f32.mrf.mxu3 }
 0x115   : > { %v615_v9 = vld [vmem:[%s3402_s0 + $0x498] sm:$0xff]  ;;  %1544 = vmatpush.msrb.mxu1 %v683_v13  ;;  %1466 = vmatmul.f32.gmra.mxu2 %v2263_v11 }
 0x116   : > { %v739_v25 = vld [vmem:[%s3402_s0 + $0x878] sm:$0xff]  ;;  %1513 = vmatpush.msrb.mxu0 %v615_v9  ;;  %v1051_v37 = vpop.f32.mrf.mxu1  ;;  %v1775_v9 = vld [vmem:[%s2015_s12 + $0x48] sm:$0xff] }
 0x117   : > { %v807_v61 = vld [vmem:[%s3402_s0 + $0xa98] sm:$0xff]  ;;  %1578 = vmatpush.msrb.mxu2 %v739_v25  ;;  %v1052_v38 = vadd.f32 %v1051_v37, %v1020_v6  ;;  %v1078_v25 = vadd.f32 %v3228_v7, %v3292_v40 }
 0x118   : > { %v611_v16 = vld [vmem:[%s3402_s0 + $0x478] sm:$0xff]  ;;  %1609 = vmatpush.msrb.mxu3 %v807_v61 }
 0x119   : > { %v679_v20 = vld [vmem:[%s3402_s0 + $0x698] sm:$0xff]  ;;  %1514 = vmatpush.msrb.mxu0 %v611_v16  ;;  %1646 = vst [vmem:[%s3098_s10 + $0x80] sm:$0xff] %v1052_v38  ;;  %v3339_v44 = vpop.f32.mrf.mxu2  ;;  %v1110_v34 = vadd.f32 %v3249_v15, %v1078_v25  ;;  %v1780_v38 = vld [vmem:[%s2015_s12 + $0xa8] sm:$0xff] }
 0x11a   : > { %v803_v52 = vld [vmem:[%s3402_s0 + $0xa78] sm:$0xff]  ;;  %1545 = vmatpush.msrb.mxu1 %v679_v20 }
 0x11b   : > { %v735_v47 = vld [vmem:[%s3402_s0 + $0x858] sm:$0xff]  ;;  %1610 = vmatpush.msrb.mxu3 %v803_v52  ;;  %1434 = vmatmul.f32.gmra.mxu1 %v2546_v14  ;;  %v1777_v52 = vld [vmem:[%s2015_s12 + $0x70] sm:$0xff] }
 0x11c   : > { %v675_v19 = vld [vmem:[%s3402_s0 + $0x678] sm:$0xff]  ;;  %1579 = vmatpush.msrb.mxu2 %v735_v47  ;;  %1498 = vmatmul.f32.gmra.mxu3 %v2291_v23  ;;  %v3348_v43 = vpop.f32.mrf.mxu3  ;;  %v1135_v29 = vpop.f32.mrf.mxu0 }
 0x11d   : > { %v607_v31 = vld [vmem:[%s3402_s0 + $0x458] sm:$0xff]  ;;  %1546 = vmatpush.msrb.mxu1 %v675_v19  ;;  %v1136_v49 = vadd.f32 %v1135_v29, %v1104_v30 }
 0x11e   : > { %v731_v11 = vld [vmem:[%s3402_s0 + $0x838] sm:$0xff]  ;;  %1515 = vmatpush.msrb.mxu0 %v607_v31  ;;  %v1081_v31 = vadd.f32 %v3282_v63, %v3292_v40  ;;  %v1084_v63 = vadd.f32 %v3339_v44, %v3292_v40 }
 0x11f   : > { %v799_v33 = vld [vmem:[%s3402_s0 + $0xa58] sm:$0xff]  ;;  %1580 = vmatpush.msrb.mxu2 %v731_v11  ;;  %v1167_v53 = vpop.f32.mrf.mxu1 }
 0x120   : > { %v603_v50 = vld [vmem:[%s3402_s0 + $0x438] sm:$0xff]  ;;  %1611 = vmatpush.msrb.mxu3 %v799_v33  ;;  %v1168_v54 = vadd.f32 %v1167_v53, %v1136_v49  ;;  %v1113_v33 = vadd.f32 %v3302_v28, %v1081_v31 }
 0x121   : > { %v671_v51 = vld [vmem:[%s3402_s0 + $0x658] sm:$0xff]  ;;  %1516 = vmatpush.msrb.mxu0 %v603_v50 }
 0x122   : > { %v795_v5 = vld [vmem:[%s3402_s0 + $0xa38] sm:$0xff]  ;;  %1547 = vmatpush.msrb.mxu1 %v671_v51  ;;  %v1199_v22 = vpop.f32.mrf.mxu2 }
 0x123   : > { %v727_v57 = vld [vmem:[%s3402_s0 + $0x818] sm:$0xff]  ;;  %1612 = vmatpush.msrb.mxu3 %v795_v5  ;;  %v1200_v55 = vadd.f32 %v1199_v22, %v1168_v54  ;;  %v856_v22 = vperm.slane %v2935_v39, 2 }
 0x124   : > { %v599_v23 = vld [vmem:[%s3402_s0 + $0x418] sm:$0xff]  ;;  %1581 = vmatpush.msrb.mxu2 %v727_v57  ;;  %v1138_v56 = vpop.f32.mrf.mxu0  ;;  %v1231_v60 = vpop.f32.mrf.mxu3 }
 0x125   : > { %v667_v41 = vld [vmem:[%s3402_s0 + $0x638] sm:$0xff]  ;;  %1517 = vmatpush.msrb.mxu0 %v599_v23  ;;  %1582 = vmatmul.f32.vlgmr.msrb.gmra.mxu2 %v1770_v32  ;;  %v1232_v45 = vadd.f32 %v1231_v60, %v1200_v55  ;;  %v1139_v13 = vadd.f32 %v1138_v56, %v1107_v48  ;;  %v1116_v23 = vadd.f32 %v3348_v43, %v1084_v63 }
 0x126   : > { %v791_v58 = vld [vmem:[%s3402_s0 + $0xa18] sm:$0xff]  ;;  %1548 = vmatpush.msrb.mxu1 %v667_v41  ;;  %1518 = vmatmul.f32.vlgmr.msrb.gmra.mxu0 %v1769_v46 }
 0x127   : > { %v663_v18 = vld [vmem:[%s3402_s0 + $0x618] sm:$0xff]  ;;  %1613 = vmatpush.msrb.mxu3 %v791_v58  ;;  %1631 = vst [vmem:[%s3098_s10 + $0x8] sm:$0xff] %v1232_v45  ;;  %v1170_v35 = vpop.f32.mrf.mxu1 }
 0x128   : > { %1549 = vmatpush.msrb.mxu1 %v663_v18  ;;  %v1771_v42 = vld [vmem:[%s2015_s12 + $0x18] sm:$0xff]  ;;  %1614 = vmatmul.f32.vlgmr.msrb.gmra.mxu3 %v1772_v17  ;;  %v1171_v3 = vadd.f32 %v1170_v35, %v1139_v13 }
 0x129   : > { %1550 = vmatmul.f32.vlgmr.msrb.gmra.mxu1 %v1771_v42  ;;  %v1776_v10 = vld [vmem:[%s2015_s12 + $0x58] sm:$0xff] }
 0x12a   : > { %v1778_v19 = vld [vmem:[%s2015_s12 + $0x78] sm:$0xff] }
 0x12b   : > { %v1202_v61 = vpop.f32.mrf.mxu2 }
 0x12c   : > { %v1203_v16 = vadd.f32 %v1202_v61, %v1171_v3  ;;  %v1234_v20 = vpop.f32.mrf.mxu3 }
 0x12d   : > { %1585 = vmatmul.f32.gmra.mxu2 %v1774_v2  ;;  %v1141_v47 = vpop.f32.mrf.mxu0 }
 0x12e   : > { %1521 = vmatmul.f32.gmra.mxu0 %v1773_v62  ;;  %v1142_v1 = vadd.f32 %v1141_v47, %v1110_v34  ;;  %v1235_v6 = vadd.f32 %v1234_v20, %v1203_v16 }
 0x12f   : > { %v1173_v7 = vpop.f32.mrf.mxu1 }
 0x130   : > { %1617 = vmatmul.f32.gmra.mxu3 %v1776_v10  ;;  %1635 = vst [vmem:[%s3098_s10 + $0x28] sm:$0xff] %v1235_v6  ;;  %v1174_v15 = vadd.f32 %v1173_v7, %v1142_v1 }
 0x131   : > { %1553 = vmatmul.f32.gmra.mxu1 %v1775_v9 }
 0x133   : > { %v1205_v11 = vpop.f32.mrf.mxu2 }
 0x134   : > { %v1206_v37 = vadd.f32 %v1205_v11, %v1174_v15 }
 0x135   : > { %1588 = vmatmul.f32.gmra.mxu2 %v3188_v26  ;;  %v1779_v26 = vld [vmem:[%s2015_s12 + $0xa0] sm:$0xff]  ;;  %v1144_v36 = vpop.f32.mrf.mxu0 }
 0x136   : > { %1524 = vmatmul.f32.gmra.mxu0 %v1777_v52  ;;  %v1145_v50 = vadd.f32 %v1144_v36, %v1113_v33  ;;  %v1237_v51 = vpop.f32.mrf.mxu3 }
 0x138   : > { %1620 = vmatmul.f32.gmra.mxu3 %v3205_v59  ;;  %v1238_v59 = vadd.f32 %v1237_v51, %v1206_v37  ;;  %v1176_v5 = vpop.f32.mrf.mxu1 }
 0x139   : > { %1556 = vmatmul.f32.gmra.mxu1 %v1778_v19  ;;  %v1177_v28 = vadd.f32 %v1176_v5, %v1145_v50 }
 0x13a   : > { %1639 = vst [vmem:[%s3098_s10 + $0x48] sm:$0xff] %v1238_v59 }
 0x13b   : > { %v1208_v57 = vpop.f32.mrf.mxu2 }
 0x13c   : > { %v1209_v41 = vadd.f32 %v1208_v57, %v1177_v28 }
 0x13d   : > { %1591 = vmatmul.f32.gmra.mxu2 %v3245_v8  ;;  %v1147_v8 = vpop.f32.mrf.mxu0 }
 0x13e   : > { %1527 = vmatmul.f32.gmra.mxu0 %v1779_v26  ;;  %v1148_v30 = vadd.f32 %v1147_v8, %v1116_v23 }
 0x140   : > { %1623 = vmatmul.f32.gmra.mxu3 %v3265_v27  ;;  %v1240_v27 = vpop.f32.mrf.mxu3  ;;  %v1179_v44 = vpop.f32.mrf.mxu1 }
 0x141   : > { %1559 = vmatmul.f32.gmra.mxu1 %v1780_v38  ;;  %v1241_v40 = vadd.f32 %v1240_v27, %v1209_v41  ;;  %v1180_v58 = vadd.f32 %v1179_v44, %v1148_v30 }
 0x143   : > { %1643 = vst [vmem:[%s3098_s10 + $0x68] sm:$0xff] %v1241_v40  ;;  %v1211_v18 = vpop.f32.mrf.mxu2 }
 0x144   : > { %v1212_v29 = vadd.f32 %v1211_v18, %v1180_v58 }
 0x145   : > { %1594 = vmatmul.f32.gmra.mxu2 %v2525_v4 }
 0x146   : > { %1530 = vmatmul.f32.gmra.mxu0 %v2268_v12  ;;  %v1263_v46 = vpop.f32.mrf.mxu0 }
 0x147   : > { %v1264_v60 = vadd.f32 %v1263_v46, %v856_v22 }
 0x148   : > { %1626 = vmatmul.f32.gmra.mxu3 %v2546_v14  ;;  %v1243_v43 = vpop.f32.mrf.mxu3 }
 0x149   : > { %1562 = vmatmul.f32.gmra.mxu1 %v2296_v24  ;;  %v1244_v32 = vadd.f32 %v1243_v43, %v1212_v29  ;;  %v1295_v12 = vpop.f32.mrf.mxu1 }
 0x14a   : > { %v1296_v2 = vadd.f32 %v1295_v12, %v1264_v60 }
 0x14b   : > { %1647 = vst [vmem:[%s3098_s10 + $0x88] sm:$0xff] %v1244_v32  ;;  %v1327_v49 = vpop.f32.mrf.mxu2 }
 0x14c   : > { %v1328_v10 = vadd.f32 %v1327_v49, %v1296_v2  ;;  %v857_v49 = vperm.slane %v2935_v39, 3 }
 0x14e   : > { %v1266_v4 = vpop.f32.mrf.mxu0 }
 0x14f   : > { %v1267_v35 = vadd.f32 %v1266_v4, %v856_v22 }
 0x150   : > { %v1359_v42 = vpop.f32.mrf.mxu3 }
 0x151   : > { %v1298_v17 = vpop.f32.mrf.mxu1  ;;  %v1360_v3 = vadd.f32 %v1359_v42, %v1328_v10 }
 0x152   : > { %v1299_v61 = vadd.f32 %v1298_v17, %v1267_v35 }
 0x155   : > { %v1330_v53 = vpop.f32.mrf.mxu2 }
 0x156   : > { %v1331_v52 = vadd.f32 %v1330_v53, %v1299_v61 }
 0x157   : > { %v1269_v24 = vpop.f32.mrf.mxu0 }
 0x158   : > { %v1362_v21 = vpop.f32.mrf.mxu3  ;;  %v1270_v1 = vadd.f32 %v1269_v24, %v856_v22 }
 0x159   : > { %v1301_v54 = vpop.f32.mrf.mxu1  ;;  %v1363_v7 = vadd.f32 %v1362_v21, %v1331_v52 }
 0x15a   : > { %v1302_v31 = vadd.f32 %v1301_v54, %v1270_v1 }
 0x15d   : > { %v1333_v14 = vpop.f32.mrf.mxu2 }
 0x15e   : > { %v1334_v26 = vadd.f32 %v1333_v14, %v1302_v31 }
 0x15f   : > { %v1272_v55 = vpop.f32.mrf.mxu0 }
 0x160   : > { %v1365_v48 = vpop.f32.mrf.mxu3  ;;  %v1273_v36 = vadd.f32 %v1272_v55, %v856_v22 }
 0x161   : > { %v1366_v38 = vadd.f32 %v1365_v48, %v1334_v26 }
 0x162   : > { %v1304_v56 = vpop.f32.mrf.mxu1 }
 0x163   : > { %v1305_v59 = vadd.f32 %v1304_v56, %v1273_v36 }
 0x165   : > { %v1336_v62 = vpop.f32.mrf.mxu2 }
 0x166   : > { %v1337_v23 = vadd.f32 %v1336_v62, %v1305_v59 }
 0x167   : > { %v1275_v45 = vpop.f32.mrf.mxu0 }
 0x168   : > { %v1368_v13 = vpop.f32.mrf.mxu3  ;;  %v1276_v41 = vadd.f32 %v1275_v45, %v856_v22 }
 0x169   : > { %v1369_v27 = vadd.f32 %v1368_v13, %v1337_v23 }
 0x16a   : > { %v1307_v9 = vpop.f32.mrf.mxu1 }
 0x16b   : > { %v1308_v40 = vadd.f32 %v1307_v9, %v1276_v41 }
 0x16d   : > { %v1339_v25 = vpop.f32.mrf.mxu2 }
 0x16e   : > { %v1340_v29 = vadd.f32 %v1339_v25, %v1308_v40 }
 0x170   : > { %v1371_v34 = vpop.f32.mrf.mxu3  ;;  %v1391_v16 = vpop.f32.mrf.mxu0 }
 0x171   : > { %v1392_v20 = vadd.f32 %v1391_v16, %v1360_v3  ;;  %v1372_v12 = vadd.f32 %v1371_v34, %v1340_v29 }
 0x173   : > { %v1423_v47 = vpop.f32.mrf.mxu1 }
 0x174   : > { %v1424_v6 = vadd.f32 %v1423_v47, %v1392_v20 }
 0x176   : > { %1632 = vst [vmem:[%s3098_s10 + $0x10] sm:$0xff] %v1424_v6  ;;  %v1455_v19 = vpop.f32.mrf.mxu2 }
 0x177   : > { %v1456_v21 = vadd.f32 %v1455_v19, %v857_v49 }
 0x178   : > { %v1394_v15 = vpop.f32.mrf.mxu0  ;;  %v1487_v11 = vpop.f32.mrf.mxu3 }
 0x179   : > { %v1395_v33 = vadd.f32 %v1394_v15, %v1363_v7  ;;  %v1488_v14 = vadd.f32 %v1487_v11, %v1456_v21 }
 0x17b   : > { %v1426_v37 = vpop.f32.mrf.mxu1 }
 0x17c   : > { %v1427_v50 = vadd.f32 %v1426_v37, %v1395_v33 }
 0x17e   : > { %1636 = vst [vmem:[%s3098_s10 + $0x30] sm:$0xff] %v1427_v50 }
 0x17f   : > { %v1458_v51 = vpop.f32.mrf.mxu2 }
 0x180   : > { %v1490_v63 = vpop.f32.mrf.mxu3  ;;  %v1459_v60 = vadd.f32 %v1458_v51, %v857_v49 }
 0x181   : > { %v1397_v5 = vpop.f32.mrf.mxu0 }
 0x182   : > { %v1398_v28 = vadd.f32 %v1397_v5, %v1366_v38  ;;  %v1491_v45 = vadd.f32 %v1490_v63, %v1459_v60 }
 0x183   : > { %v1429_v57 = vpop.f32.mrf.mxu1 }
 0x184   : > { %v1430_v8 = vadd.f32 %v1429_v57, %v1398_v28 }
 0x186   : > { %1640 = vst [vmem:[%s3098_s10 + $0x50] sm:$0xff] %v1430_v8 }
 0x187   : > { %v1461_v30 = vpop.f32.mrf.mxu2 }
 0x188   : > { %v1462_v3 = vadd.f32 %v1461_v30, %v857_v49 }
 0x189   : > { %v1400_v44 = vpop.f32.mrf.mxu0 }
 0x18a   : > { %v1401_v58 = vadd.f32 %v1400_v44, %v1369_v27  ;;  %v1493_v18 = vpop.f32.mrf.mxu3 }
 0x18b   : > { %v1494_v16 = vadd.f32 %v1493_v18, %v1462_v3 }
 0x18f   : > { %v1464_v32 = vpop.f32.mrf.mxu2 }
 0x190   : > { %v1432_v43 = vpop.f32.mrf.mxu1  ;;  %v1465_v7 = vadd.f32 %v1464_v32, %v857_v49 }
 0x191   : > { %v1433_v46 = vadd.f32 %v1432_v43, %v1401_v58  ;;  %v1403_v4 = vpop.f32.mrf.mxu0 }
 0x192   : > { %v1404_v42 = vadd.f32 %v1403_v4, %v1372_v12 }
 0x193   : > { %1644 = vst [vmem:[%s3098_s10 + $0x70] sm:$0xff] %v1433_v46 }
 0x197   : > { %v1496_v17 = vpop.f32.mrf.mxu3 }
 0x198   : > { %v1435_v53 = vpop.f32.mrf.mxu1  ;;  %v1467_v54 = vpop.f32.mrf.mxu2  ;;  %v1497_v11 = vadd.f32 %v1496_v17, %v1465_v7 }
 0x199   : > { %v1436_v24 = vadd.f32 %v1435_v53, %v1404_v42  ;;  %v1468_v38 = vadd.f32 %v1467_v54, %v857_v49 }
 0x19b   : > { %1648 = vst [vmem:[%s3098_s10 + $0x90] sm:$0xff] %v1436_v24 }
 0x19f   : > { %v1499_v22 = vpop.f32.mrf.mxu3 }
 0x1a0   : > { %v1500_v5 = vadd.f32 %v1499_v22, %v1468_v38 }
 0x1a3   : > { %v1519_v55 = vpop.f32.mrf.mxu0 }
 0x1a4   : > { %v1520_v48 = vadd.f32 %v1519_v55, %v1488_v14 }
 0x1a6   : > { %v1551_v56 = vpop.f32.mrf.mxu1 }
 0x1a7   : > { %v1552_v62 = vadd.f32 %v1551_v56, %v1520_v48 }
 0x1a8   : > { %v1583_v2 = vpop.f32.mrf.mxu2 }
 0x1a9   : > { %v1584_v13 = vadd.f32 %v1583_v2, %v1552_v62 }
 0x1ab   : > { %v1522_v39 = vpop.f32.mrf.mxu0  ;;  %v1615_v9 = vpop.f32.mrf.mxu3 }
 0x1ac   : > { %v1523_v10 = vadd.f32 %v1522_v39, %v1491_v45  ;;  %v1616_v35 = vadd.f32 %v1615_v9, %v1584_v13 }
 0x1ae   : > { %v1554_v25 = vpop.f32.mrf.mxu1  ;;  %1633 = vst [vmem:[%s3098_s10 + $0x18] sm:$0xff] %v1616_v35 }
 0x1af   : > { %v1555_v61 = vadd.f32 %v1554_v25, %v1523_v10 }
 0x1b0   : > { %v1586_v34 = vpop.f32.mrf.mxu2 }
 0x1b1   : > { %v1587_v20 = vadd.f32 %v1586_v34, %v1555_v61 }
 0x1b3   : > { %v1525_v52 = vpop.f32.mrf.mxu0  ;;  %v1618_v47 = vpop.f32.mrf.mxu3 }
 0x1b4   : > { %v1526_v1 = vadd.f32 %v1525_v52, %v1494_v16  ;;  %v1619_v6 = vadd.f32 %v1618_v47, %v1587_v20 }
 0x1b6   : > { %v1557_v19 = vpop.f32.mrf.mxu1  ;;  %1637 = vst [vmem:[%s3098_s10 + $0x38] sm:$0xff] %v1619_v6 }
 0x1b7   : > { %v1558_v31 = vadd.f32 %v1557_v19, %v1526_v1 }
 0x1b8   : > { %v1589_v15 = vpop.f32.mrf.mxu2 }
 0x1b9   : > { %v1590_v33 = vadd.f32 %v1589_v15, %v1558_v31 }
 0x1bb   : > { %v1528_v37 = vpop.f32.mrf.mxu0  ;;  %v1621_v26 = vpop.f32.mrf.mxu3 }
 0x1bc   : > { %v1529_v36 = vadd.f32 %v1528_v37, %v1497_v11  ;;  %v1622_v50 = vadd.f32 %v1621_v26, %v1590_v33 }
 0x1be   : > { %v1560_v51 = vpop.f32.mrf.mxu1  ;;  %1641 = vst [vmem:[%s3098_s10 + $0x58] sm:$0xff] %v1622_v50 }
 0x1bf   : > { %v1561_v59 = vadd.f32 %v1560_v51, %v1529_v36 }
 0x1c0   : > { %v1592_v63 = vpop.f32.mrf.mxu2 }
 0x1c1   : > { %v1593_v28 = vadd.f32 %v1592_v63, %v1561_v59 }
 0x1c3   : > { %v1531_v57 = vpop.f32.mrf.mxu0  ;;  %v1624_v23 = vpop.f32.mrf.mxu3 }
 0x1c4   : > { %v1532_v41 = vadd.f32 %v1531_v57, %v1500_v5  ;;  %v1625_v8 = vadd.f32 %v1624_v23, %v1593_v28 }
 0x1c6   : > { %v1563_v30 = vpop.f32.mrf.mxu1  ;;  %1645 = vst [vmem:[%s3098_s10 + $0x78] sm:$0xff] %v1625_v8 }
 0x1c7   : > { %v1564_v27 = vadd.f32 %v1563_v30, %v1532_v41 }
 0x1c8   : > { %v1595_v40 = vpop.f32.mrf.mxu2 }
 0x1c9   : > { %v1596_v44 = vadd.f32 %v1595_v40, %v1564_v27 }
 0x1cb   : > { %v1627_v58 = vpop.f32.mrf.mxu3 }
 0x1cc   : > { %v1628_v18 = vadd.f32 %v1627_v58, %v1596_v44 }
 0x1ce   : > { %1649 = vst [vmem:[%s3098_s10 + $0x98] sm:$0xff] %v1628_v18 }
 0x1cf PF: > { %s15_s17 = sadd.s32 1, %s1787_s17  }
 0x1d0   : > { %p12_p6 = scmp.ge.s32.totalorder %s15_s17, 4  }
 0x1d2   :  { %14 = sbr.rel (!%p12_p6) target bundleno = 2 (0x2), region = 120 }

</bundles_post_ra>
